<compile_context>
chip_gen: v6e
topology: v6e:2x2x1
jax: 0.10.0
libtpu: 0.0.40
codegen_flags: <defaults>
</compile_context>

<pallas_src>
import jax
import jax.numpy as jnp
from jax.experimental import pallas as pl
from jax.experimental.pallas import tpu as pltpu

HIDDEN1_UNITS = 300
HIDDEN2_UNITS = 600

H1P = 384                 # HIDDEN1_UNITS padded to a multiple of 128
H2P = 640                 # HIDDEN2_UNITS padded to a multiple of 128
TILE_N = 128              # column tile of the 640x640 weights
N_COL_TILES = H2P // TILE_N   # 5


def _forward_flops(batch, state_size, action_size):
    H1, H2 = HIDDEN1_UNITS, HIDDEN2_UNITS
    return 2 * batch * (
        state_size * H1
        + H1 * H2
        + 2 * action_size * H2
        + 2 * H2 * H2
        + 2 * H2 * action_size
    )


# ---------------------------------------------------------------------------
# Kernel: grid=(N_COL_TILES,).  Step j streams column tile j of both heads'
# padded 640x640 bf16 weights and adds that tile's V-head contribution to the
# resident (2, B, A) output accumulator.
# ---------------------------------------------------------------------------
def _critic_kernel(
    s_ref, a_ref,
    w11_w_ref, w11_b_ref, h11_w_ref, h11_b_ref,
    a_w_ref, a_b_ref, h3_w_ref, h3_b_ref, v_w_ref, v_b_ref,
    out_ref,
    h2_sc,
):
    j = pl.program_id(0)

    # Shared trunk + per-head h2: computed once at the first grid step,
    # persists in VMEM scratch for all later column tiles.
    @pl.when(j == 0)
    def _():
        w11 = jnp.maximum(
            jnp.dot(s_ref[...], w11_w_ref[...],
                    preferred_element_type=jnp.float32) + w11_b_ref[...],
            0.0)
        h11 = (jnp.dot(w11.astype(h11_w_ref.dtype), h11_w_ref[...],
                       preferred_element_type=jnp.float32) + h11_b_ref[...])
        for h in range(2):
            a_act = (jnp.dot(a_ref[...], a_w_ref[h],
                             preferred_element_type=jnp.float32) + a_b_ref[h])
            # PyTorch quirk: head 1 reuses h11 (h22 = h11 + a12; w12/h12 dead).
            h2_sc[h] = (h11 + a_act).astype(h2_sc.dtype)
            # Output block stays resident across the whole grid: init w/ bias.
            out_ref[h] = jnp.broadcast_to(v_b_ref[h], out_ref.shape[1:])

    # Column tile of the dominant matmul + its V-head partial contribution.
    for h in range(2):
        h3_t = jnp.maximum(
            jnp.dot(h2_sc[h], h3_w_ref[h],
                    preferred_element_type=jnp.float32) + h3_b_ref[h],
            0.0)
        out_ref[h] += jnp.dot(h3_t, v_w_ref[h],
                              preferred_element_type=jnp.float32)


# ---------------------------------------------------------------------------
# Wrapper
# ---------------------------------------------------------------------------
def critic_forward(s, a, prep):
    """Returns (out1, out2) == PyTorch CriticNetwork.forward(s, a)."""
    batch, state_size = s.shape
    action_size = a.shape[1]

    args = (
        s, a,
        prep["w11_w"], prep["w11_b"], prep["h11_w"], prep["h11_b"],
        prep["a_w"], prep["a_b"], prep["h3_w"], prep["h3_b"],
        prep["v_w"], prep["v_b"],
    )

    in_specs = [
        # Trunk / small operands: constant block index -> DMA'd once.
        pl.BlockSpec((batch, state_size), lambda j: (0, 0)),          # s
        pl.BlockSpec((batch, action_size), lambda j: (0, 0)),         # a
        pl.BlockSpec((state_size, H1P), lambda j: (0, 0)),            # w11_w
        pl.BlockSpec((1, H1P), lambda j: (0, 0)),                     # w11_b
        pl.BlockSpec((H1P, H2P), lambda j: (0, 0)),                   # h11_w bf16
        pl.BlockSpec((1, H2P), lambda j: (0, 0)),                     # h11_b
        pl.BlockSpec((2, action_size, H2P), lambda j: (0, 0, 0)),     # a11|a12 w
        pl.BlockSpec((2, 1, H2P), lambda j: (0, 0, 0)),               # a11|a12 b
        # Dominant stream: column tile j of both heads' 640x640 bf16 weights.
        pl.BlockSpec((2, H2P, TILE_N), lambda j: (0, 0, j)),          # h31|h32 w
        pl.BlockSpec((2, 1, TILE_N), lambda j: (0, 0, j)),            # h31|h32 b
        pl.BlockSpec((2, TILE_N, action_size), lambda j: (0, j, 0)),  # V1|V2 w
        pl.BlockSpec((2, 1, action_size), lambda j: (0, 0, 0)),       # V1|V2 b
    ]
    out_spec = pl.BlockSpec((2, batch, action_size), lambda j: (0, 0, 0))

    out_bytes = 2 * batch * action_size * 4
    cost = pl.CostEstimate(
        flops=_forward_flops(batch, state_size, action_size),
        transcendentals=0,
        bytes_accessed=int(sum(int(x.size) * x.dtype.itemsize for x in args))
        + out_bytes,
    )

    out = pl.pallas_call(
        _critic_kernel,
        out_shape=jax.ShapeDtypeStruct((2, batch, action_size), jnp.float32),
        grid=(N_COL_TILES,),
        in_specs=in_specs,
        out_specs=out_spec,
        scratch_shapes=[pltpu.VMEM((2, batch, H2P), jnp.bfloat16)],
        compiler_params=pltpu.CompilerParams(
            dimension_semantics=("arbitrary",),
            vmem_limit_bytes=6 * 1024 * 1024,   # working set ~2.2 MiB dbl-buffered
        ),
        cost_estimate=cost,
    )(*args)
    return out[0], out[1]


# ---------------------------------------------------------------------------
# Parameter prep / init / reference
# ---------------------------------------------------------------------------
def prepare_params(params, state_size, action_size):
    """One-time prep: zero-pad every lane dim to a multiple of 128
    (H1 300->384, H2 600->640 -- exact zeros, results unchanged), bf16-cast
    the three big weights, and stack the per-head tensors."""
    A = action_size

    def pad2(x, rows, cols):
        out = jnp.zeros((rows, cols), x.dtype)
        return out.at[: x.shape[0], : x.shape[1]].set(x)

    return {
        "w11_w": pad2(params["w11_w"], state_size, H1P),
        "w11_b": pad2(params["w11_b"], 1, H1P),
        "h11_w": pad2(params["h11_w"], H1P, H2P).astype(jnp.bfloat16),
        "h11_b": pad2(params["h11_b"], 1, H2P),
        "a_w": jnp.stack([pad2(params["a11_w"], A, H2P),
                          pad2(params["a12_w"], A, H2P)]),
        "a_b": jnp.stack([pad2(params["a11_b"], 1, H2P),
                          pad2(params["a12_b"], 1, H2P)]),
        "h3_w": jnp.stack([pad2(params["h31_w"], H2P, H2P).astype(jnp.bfloat16),
                           pad2(params["h32_w"], H2P, H2P).astype(jnp.bfloat16)]),
        "h3_b": jnp.stack([pad2(params["h31_b"], 1, H2P),
                           pad2(params["h32_b"], 1, H2P)]),
        "v_w": jnp.stack([pad2(params["V1_w"], H2P, A),
                          pad2(params["V2_w"], H2P, A)]),
        "v_b": jnp.stack([params["V1_b"], params["V2_b"]]),
    }


def init_params(key, state_size, action_size):
    """Deterministic parameter init (Linear weight stored transposed: (in, out))."""
    layer_shapes = {
        "w11": (state_size, HIDDEN1_UNITS),
        "a11": (action_size, HIDDEN2_UNITS),
        "h11": (HIDDEN1_UNITS, HIDDEN2_UNITS),
        "h31": (HIDDEN2_UNITS, HIDDEN2_UNITS),
        "V1": (HIDDEN2_UNITS, action_size),
        "w12": (state_size, HIDDEN1_UNITS),     # dead code in forward(), parity only
        "a12": (action_size, HIDDEN2_UNITS),
        "h12": (HIDDEN1_UNITS, HIDDEN2_UNITS),  # dead code in forward(), parity only
        "h32": (HIDDEN2_UNITS, HIDDEN2_UNITS),
        "V2": (HIDDEN2_UNITS, action_size),
    }
    params = {}
    for name, (fan_in, fan_out) in layer_shapes.items():
        key, kw, kb = jax.random.split(key, 3)
        bound = 1.0 / float(fan_in) ** 0.5   # matches torch.nn.Linear default range
        params[f"{name}_w"] = jax.random.uniform(
            kw, (fan_in, fan_out), jnp.float32, -bound, bound)
        params[f"{name}_b"] = jax.random.uniform(
            kb, (1, fan_out), jnp.float32, -bound, bound)
    return params


def critic_reference(s, a, p, *, big_weight_dtype=jnp.float32):
    """Pure-JAX reference mirroring the PyTorch forward exactly; with
    big_weight_dtype=bfloat16 it also mirrors the kernel's mixed precision."""
    def lin(x, w, b):
        return jnp.dot(x.astype(w.dtype), w, preferred_element_type=jnp.float32) + b
    big = lambda name: p[name].astype(big_weight_dtype)

    w11 = jax.nn.relu(lin(s, p["w11_w"], p["w11_b"]))
    a11 = lin(a, p["a11_w"], p["a11_b"])
    h11 = lin(w11, big("h11_w"), p["h11_b"])
    h21 = h11 + a11
    h31 = jax.nn.relu(lin(h21, big("h31_w"), p["h31_b"]))
    out1 = lin(h31, p["V1_w"], p["V1_b"])
    # PyTorch quirk: h22 reuses h11 (w12/h12 are computed but unused there).
    a12 = lin(a, p["a12_w"], p["a12_b"])
    h22 = h11 + a12
    h32 = jax.nn.relu(lin(h22, big("h32_w"), p["h32_b"]))
    out2 = lin(h32, p["V2_w"], p["V2_b"])
    return out1, out2


if __name__ == "__main__":
    batch, state_size, action_size = 8, 16, 4

    key = jax.random.PRNGKey(0)
    key, ks, ka, kp = jax.random.split(key, 4)
    s = jax.random.normal(ks, (batch, state_size), jnp.float32)
    a = jax.random.normal(ka, (batch, action_size), jnp.float32)
    params = init_params(kp, state_size, action_size)
    prep = prepare_params(params, state_size, action_size)

    fwd = jax.jit(critic_forward)
    out1, out2 = jax.block_until_ready(fwd(s, a, prep))

    # Tight check vs a reference that mirrors the bf16 weight storage, plus a
    # looser check vs the original all-f32 module semantics (bf16 quantization).
    ref1_mx, ref2_mx = critic_reference(s, a, params, big_weight_dtype=jnp.bfloat16)
    ref1_f32, ref2_f32 = critic_reference(s, a, params)

    assert out1.shape == (batch, action_size) and out2.shape == (batch, action_size)
    assert jnp.allclose(out1, ref1_mx, atol=2e-3, rtol=2e-3)
    assert jnp.allclose(out2, ref2_mx, atol=2e-3, rtol=2e-3)
    assert jnp.allclose(out1, ref1_f32, atol=5e-2, rtol=5e-2)
    assert jnp.allclose(out2, ref2_f32, atol=5e-2, rtol=5e-2)

    print("KERNEL_OK")
</pallas_src>

<mosaic_0001>
module attributes {stable_mosaic.version = 11 : i64} {
  func.func @_critic_kernel(%arg0: i32, %arg1: memref<8x16xf32, #tpu.memory_space<vmem>>, %arg2: memref<8x4xf32, #tpu.memory_space<vmem>>, %arg3: memref<16x384xf32, #tpu.memory_space<vmem>>, %arg4: memref<1x384xf32, #tpu.memory_space<vmem>>, %arg5: memref<384x640xbf16, #tpu.memory_space<vmem>>, %arg6: memref<1x640xf32, #tpu.memory_space<vmem>>, %arg7: memref<2x4x640xf32, #tpu.memory_space<vmem>>, %arg8: memref<2x1x640xf32, #tpu.memory_space<vmem>>, %arg9: memref<2x640x128xbf16, #tpu.memory_space<vmem>>, %arg10: memref<2x1x128xf32, #tpu.memory_space<vmem>>, %arg11: memref<2x128x4xf32, #tpu.memory_space<vmem>>, %arg12: memref<2x1x4xf32, #tpu.memory_space<vmem>>, %arg13: memref<2x8x4xf32, #tpu.memory_space<vmem>>, %arg14: memref<2x8x640xbf16, #tpu.memory_space<vmem>>) attributes {dimension_semantics = [#tpu.dimension_semantics<arbitrary>], iteration_bounds = array<i64: 5>, scalar_prefetch = 0 : i64, scratch_operands = 1 : i64, tpu.core_type = #tpu.core_type<tc>, window_params = [{pipeline_mode = #tpu.pipeline_mode<synchronous>, transform_indices = @transform_0, window_bounds = array<i64: 8, 16>}, {pipeline_mode = #tpu.pipeline_mode<synchronous>, transform_indices = @transform_1, window_bounds = array<i64: 8, 4>}, {pipeline_mode = #tpu.pipeline_mode<synchronous>, transform_indices = @transform_2, window_bounds = array<i64: 16, 384>}, {pipeline_mode = #tpu.pipeline_mode<synchronous>, transform_indices = @transform_3, window_bounds = array<i64: 1, 384>}, {pipeline_mode = #tpu.pipeline_mode<synchronous>, transform_indices = @transform_4, window_bounds = array<i64: 384, 640>}, {pipeline_mode = #tpu.pipeline_mode<synchronous>, transform_indices = @transform_5, window_bounds = array<i64: 1, 640>}, {pipeline_mode = #tpu.pipeline_mode<synchronous>, transform_indices = @transform_6, window_bounds = array<i64: 2, 4, 640>}, {pipeline_mode = #tpu.pipeline_mode<synchronous>, transform_indices = @transform_7, window_bounds = array<i64: 2, 1, 640>}, {transform_indices = @transform_8, window_bounds = array<i64: 2, 640, 128>}, {transform_indices = @transform_9, window_bounds = array<i64: 2, 1, 128>}, {transform_indices = @transform_10, window_bounds = array<i64: 2, 128, 4>}, {pipeline_mode = #tpu.pipeline_mode<synchronous>, transform_indices = @transform_11, window_bounds = array<i64: 2, 1, 4>}, {pipeline_mode = #tpu.pipeline_mode<synchronous>, transform_indices = @transform_12, window_bounds = array<i64: 2, 8, 4>}]} {
    %c0_i32 = arith.constant 0 : i32
    %0 = arith.cmpi eq, %arg0, %c0_i32 : i32
    %1 = arith.extui %0 : i1 to i32
    %c0_i32_0 = arith.constant 0 : i32
    %2 = arith.cmpi ne, %1, %c0_i32_0 : i32
    scf.if %2 {
      %c0_40 = arith.constant 0 : index
      %c0_41 = arith.constant 0 : index
      %43 = vector.load %arg1[%c0_40, %c0_41] : memref<8x16xf32, #tpu.memory_space<vmem>>, vector<8x16xf32>
      %c0_42 = arith.constant 0 : index
      %c0_43 = arith.constant 0 : index
      %44 = vector.load %arg3[%c0_42, %c0_43] : memref<16x384xf32, #tpu.memory_space<vmem>>, vector<16x384xf32>
      %cst_44 = arith.constant dense<0.000000e+00> : vector<8x384xf32>
      %45 = tpu.matmul %43, %44, %cst_44 {dimension_numbers = #tpu.dot_dimension_numbers<[1], [0], [0], [1], [0, 0, 1, 1], [], []>} : vector<8x16xf32>, vector<16x384xf32>, vector<8x384xf32> -> vector<8x384xf32>
      %c0_45 = arith.constant 0 : index
      %c0_46 = arith.constant 0 : index
      %46 = vector.load %arg4[%c0_45, %c0_46] : memref<1x384xf32, #tpu.memory_space<vmem>>, vector<1x384xf32>
      %47 = vector.broadcast %46 : vector<1x384xf32> to vector<8x384xf32>
      %48 = arith.addf %45, %47 : vector<8x384xf32>
      %cst_47 = arith.constant 0.000000e+00 : f32
      %49 = vector.broadcast %cst_47 : f32 to vector<8x384xf32>
      %50 = arith.maximumf %48, %49 : vector<8x384xf32>
      %51 = arith.truncf %50 : vector<8x384xf32> to vector<8x384xbf16>
      %c0_48 = arith.constant 0 : index
      %c0_49 = arith.constant 0 : index
      %52 = vector.load %arg5[%c0_48, %c0_49] : memref<384x640xbf16, #tpu.memory_space<vmem>>, vector<384x640xbf16>
      %cst_50 = arith.constant dense<0.000000e+00> : vector<8x640xf32>
      %53 = tpu.matmul %51, %52, %cst_50 {dimension_numbers = #tpu.dot_dimension_numbers<[1], [0], [0], [1], [0, 0, 1, 1], [], []>} : vector<8x384xbf16>, vector<384x640xbf16>, vector<8x640xf32> -> vector<8x640xf32>
      %c0_51 = arith.constant 0 : index
      %c0_52 = arith.constant 0 : index
      %54 = vector.load %arg6[%c0_51, %c0_52] : memref<1x640xf32, #tpu.memory_space<vmem>>, vector<1x640xf32>
      %55 = vector.broadcast %54 : vector<1x640xf32> to vector<8x640xf32>
      %56 = arith.addf %53, %55 : vector<8x640xf32>
      %c0_53 = arith.constant 0 : index
      %c0_54 = arith.constant 0 : index
      %57 = vector.load %arg2[%c0_53, %c0_54] : memref<8x4xf32, #tpu.memory_space<vmem>>, vector<8x4xf32>
      %c0_55 = arith.constant 0 : index
      %c0_56 = arith.constant 0 : index
      %c0_57 = arith.constant 0 : index
      %58 = vector.load %arg7[%c0_55, %c0_56, %c0_57] : memref<2x4x640xf32, #tpu.memory_space<vmem>>, vector<1x4x640xf32>
      %59 = vector.shape_cast %58 : vector<1x4x640xf32> to vector<4x640xf32>
      %cst_58 = arith.constant dense<0.000000e+00> : vector<8x640xf32>
      %60 = tpu.matmul %57, %59, %cst_58 {dimension_numbers = #tpu.dot_dimension_numbers<[1], [0], [0], [1], [0, 0, 1, 1], [], []>} : vector<8x4xf32>, vector<4x640xf32>, vector<8x640xf32> -> vector<8x640xf32>
      %c0_59 = arith.constant 0 : index
      %c0_60 = arith.constant 0 : index
      %c0_61 = arith.constant 0 : index
      %61 = vector.load %arg8[%c0_59, %c0_60, %c0_61] : memref<2x1x640xf32, #tpu.memory_space<vmem>>, vector<1x1x640xf32>
      %62 = vector.shape_cast %61 : vector<1x1x640xf32> to vector<1x640xf32>
      %63 = vector.broadcast %62 : vector<1x640xf32> to vector<8x640xf32>
      %64 = arith.addf %60, %63 : vector<8x640xf32>
      %65 = arith.addf %56, %64 : vector<8x640xf32>
      %66 = arith.truncf %65 : vector<8x640xf32> to vector<8x640xbf16>
      %c0_62 = arith.constant 0 : index
      %c0_63 = arith.constant 0 : index
      %c0_64 = arith.constant 0 : index
      %67 = vector.load %arg14[%c0_62, %c0_63, %c0_64] : memref<2x8x640xbf16, #tpu.memory_space<vmem>>, vector<1x8x640xbf16>
      %68 = vector.shape_cast %67 : vector<1x8x640xbf16> to vector<8x640xbf16>
      %69 = vector.shape_cast %66 : vector<8x640xbf16> to vector<1x8x640xbf16>
      tpu.vector_store %arg14[%c0_62, %c0_63, %c0_64], %69 {strides = array<i32>} : memref<2x8x640xbf16, #tpu.memory_space<vmem>>, vector<1x8x640xbf16>,
      %c0_65 = arith.constant 0 : index
      %c0_66 = arith.constant 0 : index
      %c0_67 = arith.constant 0 : index
      %70 = vector.load %arg12[%c0_65, %c0_66, %c0_67] : memref<2x1x4xf32, #tpu.memory_space<vmem>>, vector<1x1x4xf32>
      %71 = vector.shape_cast %70 : vector<1x1x4xf32> to vector<1x4xf32>
      %72 = vector.shape_cast %71 : vector<1x4xf32> to vector<1x4xf32>
      %73 = vector.broadcast %72 : vector<1x4xf32> to vector<8x4xf32>
      %c0_68 = arith.constant 0 : index
      %c0_69 = arith.constant 0 : index
      %c0_70 = arith.constant 0 : index
      %74 = vector.load %arg13[%c0_68, %c0_69, %c0_70] : memref<2x8x4xf32, #tpu.memory_space<vmem>>, vector<1x8x4xf32>
      %75 = vector.shape_cast %74 : vector<1x8x4xf32> to vector<8x4xf32>
      %76 = vector.shape_cast %73 : vector<8x4xf32> to vector<1x8x4xf32>
      tpu.vector_store %arg13[%c0_68, %c0_69, %c0_70], %76 {strides = array<i32>} : memref<2x8x4xf32, #tpu.memory_space<vmem>>, vector<1x8x4xf32>,
      %c0_71 = arith.constant 0 : index
      %c0_72 = arith.constant 0 : index
      %77 = vector.load %arg2[%c0_71, %c0_72] : memref<8x4xf32, #tpu.memory_space<vmem>>, vector<8x4xf32>
      %c1_73 = arith.constant 1 : index
      %c0_74 = arith.constant 0 : index
      %c0_75 = arith.constant 0 : index
      %78 = vector.load %arg7[%c1_73, %c0_74, %c0_75] : memref<2x4x640xf32, #tpu.memory_space<vmem>>, vector<1x4x640xf32>
      %79 = vector.shape_cast %78 : vector<1x4x640xf32> to vector<4x640xf32>
      %cst_76 = arith.constant dense<0.000000e+00> : vector<8x640xf32>
      %80 = tpu.matmul %77, %79, %cst_76 {dimension_numbers = #tpu.dot_dimension_numbers<[1], [0], [0], [1], [0, 0, 1, 1], [], []>} : vector<8x4xf32>, vector<4x640xf32>, vector<8x640xf32> -> vector<8x640xf32>
      %c1_77 = arith.constant 1 : index
      %c0_78 = arith.constant 0 : index
      %c0_79 = arith.constant 0 : index
      %81 = vector.load %arg8[%c1_77, %c0_78, %c0_79] : memref<2x1x640xf32, #tpu.memory_space<vmem>>, vector<1x1x640xf32>
      %82 = vector.shape_cast %81 : vector<1x1x640xf32> to vector<1x640xf32>
      %83 = vector.broadcast %82 : vector<1x640xf32> to vector<8x640xf32>
      %84 = arith.addf %80, %83 : vector<8x640xf32>
      %85 = arith.addf %56, %84 : vector<8x640xf32>
      %86 = arith.truncf %85 : vector<8x640xf32> to vector<8x640xbf16>
      %c1_80 = arith.constant 1 : index
      %c0_81 = arith.constant 0 : index
      %c0_82 = arith.constant 0 : index
      %87 = vector.load %arg14[%c1_80, %c0_81, %c0_82] : memref<2x8x640xbf16, #tpu.memory_space<vmem>>, vector<1x8x640xbf16>
      %88 = vector.shape_cast %87 : vector<1x8x640xbf16> to vector<8x640xbf16>
      %89 = vector.shape_cast %86 : vector<8x640xbf16> to vector<1x8x640xbf16>
      tpu.vector_store %arg14[%c1_80, %c0_81, %c0_82], %89 {strides = array<i32>} : memref<2x8x640xbf16, #tpu.memory_space<vmem>>, vector<1x8x640xbf16>,
      %c1_83 = arith.constant 1 : index
      %c0_84 = arith.constant 0 : index
      %c0_85 = arith.constant 0 : index
      %90 = vector.load %arg12[%c1_83, %c0_84, %c0_85] : memref<2x1x4xf32, #tpu.memory_space<vmem>>, vector<1x1x4xf32>
      %91 = vector.shape_cast %90 : vector<1x1x4xf32> to vector<1x4xf32>
      %92 = vector.shape_cast %91 : vector<1x4xf32> to vector<1x4xf32>
      %93 = vector.broadcast %92 : vector<1x4xf32> to vector<8x4xf32>
      %c1_86 = arith.constant 1 : index
      %c0_87 = arith.constant 0 : index
      %c0_88 = arith.constant 0 : index
      %94 = vector.load %arg13[%c1_86, %c0_87, %c0_88] : memref<2x8x4xf32, #tpu.memory_space<vmem>>, vector<1x8x4xf32>
      %95 = vector.shape_cast %94 : vector<1x8x4xf32> to vector<8x4xf32>
      %96 = vector.shape_cast %93 : vector<8x4xf32> to vector<1x8x4xf32>
      tpu.vector_store %arg13[%c1_86, %c0_87, %c0_88], %96 {strides = array<i32>} : memref<2x8x4xf32, #tpu.memory_space<vmem>>, vector<1x8x4xf32>,
    } else {
    }
    %c0 = arith.constant 0 : index
    %c0_1 = arith.constant 0 : index
    %c0_2 = arith.constant 0 : index
    %3 = vector.load %arg14[%c0, %c0_1, %c0_2] : memref<2x8x640xbf16, #tpu.memory_space<vmem>>, vector<1x8x640xbf16>
    %4 = vector.shape_cast %3 : vector<1x8x640xbf16> to vector<8x640xbf16>
    %c0_3 = arith.constant 0 : index
    %c0_4 = arith.constant 0 : index
    %c0_5 = arith.constant 0 : index
    %5 = vector.load %arg9[%c0_3, %c0_4, %c0_5] : memref<2x640x128xbf16, #tpu.memory_space<vmem>>, vector<1x640x128xbf16>
    %6 = vector.shape_cast %5 : vector<1x640x128xbf16> to vector<640x128xbf16>
    %cst = arith.constant dense<0.000000e+00> : vector<8x128xf32>
    %7 = tpu.matmul %4, %6, %cst {dimension_numbers = #tpu.dot_dimension_numbers<[1], [0], [0], [1], [0, 0, 1, 1], [], []>} : vector<8x640xbf16>, vector<640x128xbf16>, vector<8x128xf32> -> vector<8x128xf32>
    %c0_6 = arith.constant 0 : index
    %c0_7 = arith.constant 0 : index
    %c0_8 = arith.constant 0 : index
    %8 = vector.load %arg10[%c0_6, %c0_7, %c0_8] : memref<2x1x128xf32, #tpu.memory_space<vmem>>, vector<1x1x128xf32>
    %9 = vector.shape_cast %8 : vector<1x1x128xf32> to vector<1x128xf32>
    %10 = vector.broadcast %9 : vector<1x128xf32> to vector<8x128xf32>
    %11 = arith.addf %7, %10 : vector<8x128xf32>
    %cst_9 = arith.constant 0.000000e+00 : f32
    %12 = vector.broadcast %cst_9 : f32 to vector<8x128xf32>
    %13 = arith.maximumf %11, %12 : vector<8x128xf32>
    %c0_10 = arith.constant 0 : index
    %c0_11 = arith.constant 0 : index
    %c0_12 = arith.constant 0 : index
    %14 = vector.load %arg13[%c0_10, %c0_11, %c0_12] : memref<2x8x4xf32, #tpu.memory_space<vmem>>, vector<1x8x4xf32>
    %15 = vector.shape_cast %14 : vector<1x8x4xf32> to vector<8x4xf32>
    %c0_13 = arith.constant 0 : index
    %c0_14 = arith.constant 0 : index
    %c0_15 = arith.constant 0 : index
    %16 = vector.load %arg11[%c0_13, %c0_14, %c0_15] : memref<2x128x4xf32, #tpu.memory_space<vmem>>, vector<1x128x4xf32>
    %17 = vector.shape_cast %16 : vector<1x128x4xf32> to vector<128x4xf32>
    %cst_16 = arith.constant dense<0.000000e+00> : vector<8x4xf32>
    %18 = tpu.matmul %13, %17, %cst_16 {dimension_numbers = #tpu.dot_dimension_numbers<[1], [0], [0], [1], [0, 0, 1, 1], [], []>} : vector<8x128xf32>, vector<128x4xf32>, vector<8x4xf32> -> vector<8x4xf32>
    %19 = arith.addf %15, %18 : vector<8x4xf32>
    %c0_17 = arith.constant 0 : index
    %c0_18 = arith.constant 0 : index
    %c0_19 = arith.constant 0 : index
    %20 = vector.load %arg13[%c0_17, %c0_18, %c0_19] : memref<2x8x4xf32, #tpu.memory_space<vmem>>, vector<1x8x4xf32>
    %21 = vector.shape_cast %20 : vector<1x8x4xf32> to vector<8x4xf32>
    %22 = vector.shape_cast %19 : vector<8x4xf32> to vector<1x8x4xf32>
    tpu.vector_store %arg13[%c0_17, %c0_18, %c0_19], %22 {strides = array<i32>} : memref<2x8x4xf32, #tpu.memory_space<vmem>>, vector<1x8x4xf32>,
    %c1 = arith.constant 1 : index
    %c0_20 = arith.constant 0 : index
    %c0_21 = arith.constant 0 : index
    %23 = vector.load %arg14[%c1, %c0_20, %c0_21] : memref<2x8x640xbf16, #tpu.memory_space<vmem>>, vector<1x8x640xbf16>
    %24 = vector.shape_cast %23 : vector<1x8x640xbf16> to vector<8x640xbf16>
    %c1_22 = arith.constant 1 : index
    %c0_23 = arith.constant 0 : index
    %c0_24 = arith.constant 0 : index
    %25 = vector.load %arg9[%c1_22, %c0_23, %c0_24] : memref<2x640x128xbf16, #tpu.memory_space<vmem>>, vector<1x640x128xbf16>
    %26 = vector.shape_cast %25 : vector<1x640x128xbf16> to vector<640x128xbf16>
    %cst_25 = arith.constant dense<0.000000e+00> : vector<8x128xf32>
    %27 = tpu.matmul %24, %26, %cst_25 {dimension_numbers = #tpu.dot_dimension_numbers<[1], [0], [0], [1], [0, 0, 1, 1], [], []>} : vector<8x640xbf16>, vector<640x128xbf16>, vector<8x128xf32> -> vector<8x128xf32>
    %c1_26 = arith.constant 1 : index
    %c0_27 = arith.constant 0 : index
    %c0_28 = arith.constant 0 : index
    %28 = vector.load %arg10[%c1_26, %c0_27, %c0_28] : memref<2x1x128xf32, #tpu.memory_space<vmem>>, vector<1x1x128xf32>
    %29 = vector.shape_cast %28 : vector<1x1x128xf32> to vector<1x128xf32>
    %30 = vector.broadcast %29 : vector<1x128xf32> to vector<8x128xf32>
    %31 = arith.addf %27, %30 : vector<8x128xf32>
    %cst_29 = arith.constant 0.000000e+00 : f32
    %32 = vector.broadcast %cst_29 : f32 to vector<8x128xf32>
    %33 = arith.maximumf %31, %32 : vector<8x128xf32>
    %c1_30 = arith.constant 1 : index
    %c0_31 = arith.constant 0 : index
    %c0_32 = arith.constant 0 : index
    %34 = vector.load %arg13[%c1_30, %c0_31, %c0_32] : memref<2x8x4xf32, #tpu.memory_space<vmem>>, vector<1x8x4xf32>
    %35 = vector.shape_cast %34 : vector<1x8x4xf32> to vector<8x4xf32>
    %c1_33 = arith.constant 1 : index
    %c0_34 = arith.constant 0 : index
    %c0_35 = arith.constant 0 : index
    %36 = vector.load %arg11[%c1_33, %c0_34, %c0_35] : memref<2x128x4xf32, #tpu.memory_space<vmem>>, vector<1x128x4xf32>
    %37 = vector.shape_cast %36 : vector<1x128x4xf32> to vector<128x4xf32>
    %cst_36 = arith.constant dense<0.000000e+00> : vector<8x4xf32>
    %38 = tpu.matmul %33, %37, %cst_36 {dimension_numbers = #tpu.dot_dimension_numbers<[1], [0], [0], [1], [0, 0, 1, 1], [], []>} : vector<8x128xf32>, vector<128x4xf32>, vector<8x4xf32> -> vector<8x4xf32>
    %39 = arith.addf %35, %38 : vector<8x4xf32>
    %c1_37 = arith.constant 1 : index
    %c0_38 = arith.constant 0 : index
    %c0_39 = arith.constant 0 : index
    %40 = vector.load %arg13[%c1_37, %c0_38, %c0_39] : memref<2x8x4xf32, #tpu.memory_space<vmem>>, vector<1x8x4xf32>
    %41 = vector.shape_cast %40 : vector<1x8x4xf32> to vector<8x4xf32>
    %42 = vector.shape_cast %39 : vector<8x4xf32> to vector<1x8x4xf32>
    tpu.vector_store %arg13[%c1_37, %c0_38, %c0_39], %42 {strides = array<i32>} : memref<2x8x4xf32, #tpu.memory_space<vmem>>, vector<1x8x4xf32>,
    return
  }
  func.func @transform_0(%arg0: i32) -> (i32, i32) {
    %c0_i32 = arith.constant 0 : i32
    %c0_i32_0 = arith.constant 0 : i32
    %c0_i32_1 = arith.constant 0 : i32
    return %c0_i32, %c0_i32_0 : i32, i32
  }
  func.func @transform_1(%arg0: i32) -> (i32, i32) {
    %c0_i32 = arith.constant 0 : i32
    %c0_i32_0 = arith.constant 0 : i32
    %c0_i32_1 = arith.constant 0 : i32
    return %c0_i32, %c0_i32_0 : i32, i32
  }
  func.func @transform_2(%arg0: i32) -> (i32, i32) {
    %c0_i32 = arith.constant 0 : i32
    %c0_i32_0 = arith.constant 0 : i32
    %c0_i32_1 = arith.constant 0 : i32
    return %c0_i32, %c0_i32_0 : i32, i32
  }
  func.func @transform_3(%arg0: i32) -> (i32, i32) {
    %c0_i32 = arith.constant 0 : i32
    %c0_i32_0 = arith.constant 0 : i32
    %c0_i32_1 = arith.constant 0 : i32
    return %c0_i32, %c0_i32_0 : i32, i32
  }
  func.func @transform_4(%arg0: i32) -> (i32, i32) {
    %c0_i32 = arith.constant 0 : i32
    %c0_i32_0 = arith.constant 0 : i32
    %c0_i32_1 = arith.constant 0 : i32
    return %c0_i32, %c0_i32_0 : i32, i32
  }
  func.func @transform_5(%arg0: i32) -> (i32, i32) {
    %c0_i32 = arith.constant 0 : i32
    %c0_i32_0 = arith.constant 0 : i32
    %c0_i32_1 = arith.constant 0 : i32
    return %c0_i32, %c0_i32_0 : i32, i32
  }
  func.func @transform_6(%arg0: i32) -> (i32, i32, i32) {
    %c0_i32 = arith.constant 0 : i32
    %c0_i32_0 = arith.constant 0 : i32
    %c0_i32_1 = arith.constant 0 : i32
    %c0_i32_2 = arith.constant 0 : i32
    return %c0_i32, %c0_i32_0, %c0_i32_1 : i32, i32, i32
  }
  func.func @transform_7(%arg0: i32) -> (i32, i32, i32) {
    %c0_i32 = arith.constant 0 : i32
    %c0_i32_0 = arith.constant 0 : i32
    %c0_i32_1 = arith.constant 0 : i32
    %c0_i32_2 = arith.constant 0 : i32
    return %c0_i32, %c0_i32_0, %c0_i32_1 : i32, i32, i32
  }
  func.func @transform_8(%arg0: i32) -> (i32, i32, i32) {
    %c0_i32 = arith.constant 0 : i32
    %c0_i32_0 = arith.constant 0 : i32
    %c0_i32_1 = arith.constant 0 : i32
    return %c0_i32, %c0_i32_0, %arg0 : i32, i32, i32
  }
  func.func @transform_9(%arg0: i32) -> (i32, i32, i32) {
    %c0_i32 = arith.constant 0 : i32
    %c0_i32_0 = arith.constant 0 : i32
    %c0_i32_1 = arith.constant 0 : i32
    return %c0_i32, %c0_i32_0, %arg0 : i32, i32, i32
  }
  func.func @transform_10(%arg0: i32) -> (i32, i32, i32) {
    %c0_i32 = arith.constant 0 : i32
    %c0_i32_0 = arith.constant 0 : i32
    %c0_i32_1 = arith.constant 0 : i32
    return %c0_i32, %arg0, %c0_i32_0 : i32, i32, i32
  }
  func.func @transform_11(%arg0: i32) -> (i32, i32, i32) {
    %c0_i32 = arith.constant 0 : i32
    %c0_i32_0 = arith.constant 0 : i32
    %c0_i32_1 = arith.constant 0 : i32
    %c0_i32_2 = arith.constant 0 : i32
    return %c0_i32, %c0_i32_0, %c0_i32_1 : i32, i32, i32
  }
  func.func @transform_12(%arg0: i32) -> (i32, i32, i32) {
    %c0_i32 = arith.constant 0 : i32
    %c0_i32_0 = arith.constant 0 : i32
    %c0_i32_1 = arith.constant 0 : i32
    %c0_i32_2 = arith.constant 0 : i32
    return %c0_i32, %c0_i32_0, %c0_i32_1 : i32, i32, i32
  }
}

</mosaic_0001>

<bundles_post_ra>
// kernel: critic_forward.1
= control target key start
LH: loop header
LB: loop body
LE: loop exit
PB: predicated region body
PF: predicated region fallthrough
CT: control target
= control target key end

     0   :  { %s5961_s0 = inlined_call_operand.hbm [shape: f32[8,16], index: 0, kind: input, shape index: {}]   ;;  %s5962_s1 = inlined_call_operand.vmem [shape: f32[8,4], index: 1, kind: input, shape index: {}]   ;;  %s5963_s2 = inlined_call_operand.hbm [shape: f32[16,384], index: 2, kind: input, shape index: {}]   ;;  %s5964_s3 = inlined_call_operand.hbm [shape: f32[1,384], index: 3, kind: input, shape index: {}]   ;;  %s5965_s4 = inlined_call_operand.hbm [shape: bf16[384,640], index: 4, kind: input, shape index: {}]   ;;  %s5966_s5 = inlined_call_operand.hbm [shape: f32[1,640], index: 5, kind: input, shape index: {}]   ;;  %s5967_s6 = inlined_call_operand.hbm [shape: f32[2,4,640], index: 6, kind: input, shape index: {}]   ;;  %s5968_s7 = inlined_call_operand.hbm [shape: f32[2,1,640], index: 7, kind: input, shape index: {}]   ;;  %s5969_s8 = inlined_call_operand.hbm [shape: bf16[2,640,640], index: 8, kind: input, shape index: {}]   ;;  %s5970_s9 = inlined_call_operand.hbm [shape: f32[2,1,640], index: 9, kind: input, shape index: {}]   ;;  %s5971_s10 = inlined_call_operand.vmem [shape: f32[2,640,4], index: 10, kind: input, shape index: {}]   ;;  %s5972_s11 = inlined_call_operand.hbm [shape: f32[2,1,4], index: 11, kind: input, shape index: {}]   ;;  %s5973_s12 = inlined_call_operand.vmem [shape: f32[2,8,4], index: 12, kind: output, shape index: {}]  }
   0x1   :  { %5982 = sst [smem:[#allocation28_spill]] %s5961_s0 }
   0x2   :  { %5983 = sst [smem:[#allocation29_spill]] %s5962_s1 }
   0x3   :  { %5984 = sst [smem:[#allocation30_spill]] %s5963_s2 }
   0x4   :  { %5985 = sst [smem:[#allocation31_spill]] %s5973_s12 }
   0x5   :  { %17 = vsyncpa [#allocation4], 0 }
   0x6   :  { %18 = vsyncpa [#allocation6], 0 }
   0x7   :  { %19 = vsyncpa [#allocation9], 0 }
   0x8   :  { %20 = vsyncpa [#allocation12], 0 }
   0x9   :  { %21 = vsyncpa [#allocation15], 0 }
   0xa   :  { %23 = vsyncpa [#allocation15 + $0x1], 0 }
   0xb   :  { %24 = vsyncpa [#allocation19], 0  ;;  %s5357_s21 = smov 0   ;;  %s5359_s22 = smov 0  }
   0xc   :  { %s5361_s23 = smov 0   ;;  %s5363_s24 = smov 0  }
   0xd LB: > { %s5376_s25 = sadd.s32 4294967295, %s5261_s24   ;;  %s5379_s26 = sadd.s32 1, %s5261_s24   ;;  %s5261_s24 = sphi %s5363_s24, %s6012_s24   ;;  %s5257_s23 = sphi %s5361_s23, %s6016_s23   ;;  %s5253_s22 = sphi %s5359_s22, %s6015_s22   ;;  %s5249_s21 = sphi %s5357_s21, %s6014_s21  }
   0xe   : > { %5986 = sst [smem:[#allocation26_spill]] %s5379_s26  ;;  %s202_s27 = ssub.s32 %s5261_s24, %s5379_s26 }
   0xf   : > { %s205_s28 = sadd.s32 1, %s5257_s23  ;;  %p203_p0 = scmp.eq.s32.totalorder %s202_s27, 0 }
  0x10   : > { %p212_p1 = scmp.ne.s32.totalorder %s5257_s23, %s5253_s22  ;;  %p213_p2 = scmp.eq.s32.totalorder %s5261_s24, 0 }
  0x11   : > { %p218_p3 = scmp.ne.s32.totalorder %s5253_s22, %s5249_s21  ;;  %p5974_p5 = scmp.eq.s32.totalorder %s5376_s25, 0 }
  0x12   : > { %s5389_s29 = scalar_select %p203_p0, %s5257_s23, %s205_s28  }
  0x13   : > { %p5391_p4 = por %p213_p2, %p212_p1  ;;  %p3847_p6 = scmp.ge.s32.totalorder %s5261_s24, 1 }
  0x14   : > { %5987 = sst [smem:[#allocation27_spill]] %s5389_s29  ;;  %p323_p7 = scmp.lt.s32.totalorder %s5261_s24, 6 }
  0x15   : > { %s5988_s30 = scalar_select %p5391_p4, 1, 0 }
  0x16   : > { %p5400_p8 = por %p5974_p5, %p218_p3  ;;  %p5405_p10 = pnand %p3847_p6, %p323_p7 }
  0x17   : > { %s5263_s15 = smov [#allocation5]   ;;  %s5264_s18 = smov [#allocation8]  }
  0x18   : > { %s5989_s13 = scalar_select %p5400_p8, 1, 0 }
  0x19   : > { %s5990_s14 = scalar_select %p5405_p10, 1, 0 }
  0x1a   : > { %s349_s16 = sshll.u32 %s5263_s15, 4  ;;  %p4585_p11 = pneg %p5405_p10  ;;  %s350_s16 = int_to_ptr.vmem [resolvable:$true] %s349_s16 }
  0x1b   : > { %s373_s19 = sshll.u32 %s5264_s18, 4  ;;  %s4958_s21 = scalar_lea.vmem %s350_s16, 768  ;;  %s374_s19 = int_to_ptr.vmem [resolvable:$true] %s373_s19 }
  0x1c   : > { %p5413_p12 = pnand %p4585_p11, %p5974_p5  ;;  %p4959_p0 = scmp.ne.s32.totalorder %s350_s16, %s4958_s21 }
  0x1d   : > { %p4966_p3 = scmp.lt.s32.totalorder %s350_s16, %s350_s16  ;;  %p4967_p6 = scmp.lt.s32.totalorder %s4958_s21, %s4958_s21 }
  0x1e   : > { %p5419_p13 = pneg %p5413_p12 }
  0x1f   : > { %p4968_p7 = por %p4967_p6, %p4966_p3 }
  0x20   : > { %p4961_p1 = pnand %p4959_p0, %p5419_p13 }
  0x22   : > { %p4962_p2 = pneg %p4961_p1 }
  0x24   : > { %p4969_p11 = pnand %p4968_p7, %p4962_p2 }
  0x26   : > { %4972 = shalt.err (!%p4969_p11)
}
  0x27   : > { %s5265_s27 = smov 384   ;;  %s5266_s28 = smov 24  }
  0x28   : > { %s5993_s2 = sld [smem:[#allocation30_spill]]  ;;  %s4984_s29 = scalar_lea.vmem %s374_s19, 15360 }
  0x29   : > { %p4985_p9 = scmp.ne.s32.totalorder %s374_s19, %s4984_s29  ;;  %p4992_p1 = scmp.lt.s32.totalorder %s374_s19, %s374_s19 }
  0x2a   : > { %p4993_p8 = scmp.lt.s32.totalorder %s4984_s29, %s4984_s29 }
  0x2b   : > { %p4987_p5 = pnand %p4985_p9, %p5419_p13 }
  0x2c   : > { %p4994_p10 = por %p4993_p8, %p4992_p1 }
  0x2d   : > { %p4988_p0 = pneg %p4987_p5 }
  0x2e   : > { %4591 = dma.hbm_to_vmem [thread:$0]  (!%p5413_p12), %s5993_s2, 768, %s350_s16, [#allocation6], %s5265_s27, %s5265_s27, %s5266_s28  }
  0x2f   : > { %p4995_p3 = pnand %p4994_p10, %p4988_p0 }
  0x31   : > { %4998 = shalt.err (!%p4995_p3)
}
  0x32   : > { %s5267_s21 = smov 320   ;;  %s5268_s26 = smov 20  }
  0x33   : > { %4597 = dma.hbm_to_vmem [thread:$0]  (!%p5413_p12), %s5965_s4, 15360, %s374_s19, [#allocation9], %s5267_s21, %s5267_s21, %s5268_s26  }
  0x34   : > { %s5269_s16 = smov [#allocation11]   ;;  %s5270_s28 = smov [#allocation3]  }
  0x35   : > { %s397_s27 = sshll.u32 %s5269_s16, 4  ;;  %s336_s15 = sshll.u32 %s5270_s28, 4  ;;  %s398_s27 = int_to_ptr.vmem [resolvable:$true] %s397_s27  ;;  %s337_s15 = int_to_ptr.vmem [resolvable:$true] %s336_s15 }
  0x36   : > { %s5010_s18 = scalar_lea.vmem %s398_s27, 640  ;;  %p5018_p10 = scmp.lt.s32.totalorder %s398_s27, %s398_s27 }
  0x37   : > { %p5011_p5 = scmp.ne.s32.totalorder %s398_s27, %s5010_s18  ;;  %p5019_p2 = scmp.lt.s32.totalorder %s5010_s18, %s5010_s18 }
  0x39   : > { %p5013_p8 = pnand %p5011_p5, %p5419_p13  ;;  %p5020_p6 = por %p5019_p2, %p5018_p10 }
  0x3b   : > { %p5014_p9 = pneg %p5013_p8 }
  0x3d   : > { %p5021_p7 = pnand %p5020_p6, %p5014_p9 }
  0x3f   : > { %5024 = shalt.err (!%p5021_p7)
}
  0x40   : > { %4603 = dma.hbm_to_vmem [thread:$0]  (!%p5413_p12), %s5967_s6, 640, %s398_s27, [#allocation12], %s5267_s21, %s5267_s21, %s5268_s26  }
  0x41   : > { %s5036_s29 = scalar_lea.vmem %s337_s15, 128  ;;  %p5044_p3 = scmp.lt.s32.totalorder %s337_s15, %s337_s15 }
  0x42   : > { %p5037_p11 = scmp.ne.s32.totalorder %s337_s15, %s5036_s29  ;;  %p5045_p5 = scmp.lt.s32.totalorder %s5036_s29, %s5036_s29 }
  0x44   : > { %p5039_p0 = pnand %p5037_p11, %p5419_p13  ;;  %p5046_p8 = por %p5045_p5, %p5044_p3 }
  0x46   : > { %p5040_p1 = pneg %p5039_p0 }
  0x48   : > { %p5047_p4 = pnand %p5046_p8, %p5040_p1 }
  0x4a   : > { %5050 = shalt.err (!%p5047_p4)
}
  0x4b   : > { %s5994_s0 = sld [smem:[#allocation28_spill]]  ;;  %s5271_s28 = smov [#allocation7]  }
  0x4c   : > { %s363_s18 = sshll.u32 %s5271_s28, 4  ;;  %s5272_s26 = smov [#allocation10]   ;;  %s364_s18 = int_to_ptr.vmem [resolvable:$true] %s363_s18 }
  0x4d   : > { %s387_s21 = sshll.u32 %s5272_s26, 4  ;;  %s5062_s27 = scalar_lea.vmem %s364_s18, 48  ;;  %s388_s21 = int_to_ptr.vmem [resolvable:$true] %s387_s21 }
  0x4e   : > { %p5063_p9 = scmp.ne.s32.totalorder %s364_s18, %s5062_s27  ;;  %s5069_s1 = scalar_lea.vmem %s364_s18, 64 }
  0x4f   : > { %p5070_p4 = scmp.lt.s32.totalorder %s364_s18, %s364_s18  ;;  %p5071_p6 = scmp.lt.s32.totalorder %s5069_s1, %s5062_s27 }
  0x50   : > { %p5065_p10 = pnand %p5063_p9, %p5419_p13 }
  0x51   : > { %4588 = dma.hbm_to_vmem [thread:$0]  (!%p5413_p12), %s5994_s0, 128, %s337_s15, [#allocation4]  }
  0x52   : > { %p5066_p2 = pneg %p5065_p10  ;;  %p5072_p7 = por %p5071_p6, %p5070_p4 }
  0x54   : > { %p5073_p11 = pnand %p5072_p7, %p5066_p2 }
  0x56   : > { %5076 = shalt.err (!%p5073_p11)
}
  0x57   : > { %4594 = dma.hbm_to_vmem [thread:$0]  (!%p5413_p12), %s5964_s3, 48, %s364_s18, [#allocation6]  }
  0x58   : > { %s5088_s29 = scalar_lea.vmem %s388_s21, 80  ;;  %s5095_s19 = scalar_lea.vmem %s388_s21, 96 }
  0x59   : > { %p5089_p0 = scmp.ne.s32.totalorder %s388_s21, %s5088_s29  ;;  %p5096_p5 = scmp.lt.s32.totalorder %s388_s21, %s388_s21 }
  0x5a   : > { %p5097_p8 = scmp.lt.s32.totalorder %s5095_s19, %s5088_s29 }
  0x5b   : > { %p5091_p1 = pnand %p5089_p0, %p5419_p13 }
  0x5c   : > { %p5098_p9 = por %p5097_p8, %p5096_p5 }
  0x5d   : > { %p5092_p3 = pneg %p5091_p1 }
  0x5f   : > { %p5099_p10 = pnand %p5098_p9, %p5092_p3 }
  0x61   : > { %5102 = shalt.err (!%p5099_p10)
}
  0x62   : > { %4600 = dma.hbm_to_vmem [thread:$0]  (!%p5413_p12), %s5966_s5, 80, %s388_s21, [#allocation9]  }
  0x63   : > { %s5273_s26 = smov [#allocation13]  }
  0x64   : > { %s410_s18 = sshll.u32 %s5273_s26, 4  ;;  %s411_s18 = int_to_ptr.vmem [resolvable:$true] %s410_s18 }
  0x65   : > { %s5114_s27 = scalar_lea.vmem %s411_s18, 160  ;;  %p5122_p7 = scmp.lt.s32.totalorder %s411_s18, %s411_s18 }
  0x66   : > { %p5115_p2 = scmp.ne.s32.totalorder %s411_s18, %s5114_s27  ;;  %p5123_p11 = scmp.lt.s32.totalorder %s5114_s27, %s5114_s27 }
  0x68   : > { %p5117_p4 = pnand %p5115_p2, %p5419_p13  ;;  %p5124_p0 = por %p5123_p11, %p5122_p7 }
  0x6a   : > { %p5118_p6 = pneg %p5117_p4 }
  0x6c   : > { %p5125_p1 = pnand %p5124_p0, %p5118_p6 }
  0x6e   : > { %5128 = shalt.err (!%p5125_p1)
}
  0x6f   : > { %s5274_s1 = smov 80   ;;  %s5275_s15 = smov 5  }
  0x70   : > { %4606 = dma.hbm_to_vmem [thread:$0]  (!%p5413_p12), %s5968_s7, 160, %s411_s18, [#allocation12], %s5274_s1, %s5274_s1, %s5275_s15  }
  0x71   : > { %s5276_s29 = smov [#allocation18]  }
  0x72   : > { %s423_s19 = sshll.u32 %s5276_s29, 4  ;;  %s424_s19 = int_to_ptr.vmem [resolvable:$true] %s423_s19 }
  0x73   : > { %s5140_s16 = scalar_lea.vmem %s424_s19, 32  ;;  %p5148_p9 = scmp.lt.s32.totalorder %s424_s19, %s424_s19 }
  0x74   : > { %p5141_p3 = scmp.ne.s32.totalorder %s424_s19, %s5140_s16  ;;  %p5149_p10 = scmp.lt.s32.totalorder %s5140_s16, %s5140_s16 }
  0x76   : > { %p5143_p5 = pnand %p5141_p3, %p5419_p13  ;;  %p5150_p2 = por %p5149_p10, %p5148_p9 }
  0x78   : > { %p5144_p8 = pneg %p5143_p5 }
  0x7a   : > { %p5151_p4 = pnand %p5150_p2, %p5144_p8 }
  0x7c   : > { %5154 = shalt.err (!%p5151_p4)
}
  0x7d   : > { %s5277_s28 = smov 16   ;;  %s5278_s26 = smov 1  }
  0x7e   : > { %4609 = dma.hbm_to_vmem [thread:$0]  (!%p5413_p12), %s5972_s11, 32, %s424_s19, [#allocation19], %s5277_s28, %s5277_s28, %s5278_s26  }
  0x7f   : > { %p3856_p6 = scmp.ge.s32.totalorder %s5261_s24, 5 }
  0x80   : > { %s437_s20 = sand.u32 (!%p3856_p6), 1, %s5261_s24   ;;  %s5482_s18 = sand.u32 (!%p3856_p6), 1, %s5257_s23  }
  0x81   : > { %433 = sbr.rel (%p3856_p6) target bundleno = 199 (0xc7), region = 52  ;;  %s3857_s15 = sshll.u32 (!%p3856_p6), %s5261_s24, 6 }
  0x82   : > { %s4547_s1 = smul.u32 (!%p3856_p6), 640, %s5482_s18  ;;  %s5489_s17 = scalar_lea.hbm (!%p3856_p6), %s5969_s8, %s3857_s15 }
  0x83   : > { %s5493_s28 = scalar_lea.sflag (!%p3856_p6), [#allocation15], %s437_s20  ;;  %s5155_s26 = scalar_lea.hbm (!%p3856_p6), %s5489_s17, 10240 }
  0x84   : > { %s441_s19 = scalar_lea.vmem (!%p3856_p6), [#allocation14], %s4547_s1  ;;  %p5156_p12 = scmp.ne.s32.totalorder (!%p3856_p6), %s5489_s17, %s5155_s26 }
  0x85   : > { %s447_s16 = sshll.u32 (!%p3856_p6), %s441_s19, 4  ;;  %p5995_p13 = scmp.ne.s32.totalorder (!%p3856_p6), %s5988_s30, 0  ;;  %s5491_s16 = int_to_ptr.vmem [resolvable:$true] %s447_s16 }
  0x86   : > { %s5159_s21 = scalar_lea.hbm %s5969_s8, 51200  ;;  %p5160_p0 = scmp.lt.s32.totalorder %s5489_s17, %s5969_s8 }
  0x87   : > { %p5157_p7 = pnand %p5156_p12, %p5995_p13  ;;  %p5161_p1 = scmp.lt.s32.totalorder %s5159_s21, %s5155_s26 }
  0x89   : > { %p5158_p11 = pneg %p5157_p7  ;;  %p5162_p3 = por %p5161_p1, %p5160_p0 }
  0x8b   : > { %p5163_p5 = pnand %p5162_p3, %p5158_p11 }
  0x8d   : > { %5166 = shalt.err (!%p5163_p5)
}
  0x8e   : > { %s5167_s20 = scalar_lea.vmem %s5491_s16, 10240  ;;  %s5279_s1 = smov [#allocation14]  }
  0x8f   : > { %p5168_p8 = scmp.ne.s32.totalorder %s5491_s16, %s5167_s20  ;;  %s5171_s19 = sshll.u32 %s5279_s1, 4  ;;  %s5172_s19 = int_to_ptr.vmem [resolvable:$false] %s5171_s19 }
  0x90   : > { %s5173_s27 = scalar_lea.vmem %s5172_s19, 20480  ;;  %p5174_p2 = scmp.lt.s32.totalorder %s5491_s16, %s5172_s19 }
  0x91   : > { %p5169_p9 = pnand %p5168_p8, %p5995_p13  ;;  %p5175_p4 = scmp.lt.s32.totalorder %s5173_s27, %s5167_s20 }
  0x93   : > { %p5170_p10 = pneg %p5169_p9  ;;  %p5176_p6 = por %p5175_p4, %p5174_p2 }
  0x95   : > { %p5177_p12 = pnand %p5176_p6, %p5170_p10 }
  0x97   : > { %5180 = shalt.err (!%p5177_p12)
}
  0x98   : > { %s5280_s26 = smov 320   ;;  %s5281_s12 = smov 64  }
  0x99   : > { %s5282_s21 = smov 4   ;;  %s3858_s15 = sshll.u32 %s5482_s18, 1 }
  0x9a   : > { %4565 = dma.hbm_to_vmem [thread:$0]  (%p5995_p13), %s5489_s17, 10240, %s5491_s16, %s5493_s28, %s5280_s26, %s5281_s12, %s5282_s21  }
  0x9b   : > { %s3859_s29 = sshll.u32 %s5261_s24, 4  ;;  %s461_s27 = scalar_lea.vmem [#allocation16], %s3858_s15 }
  0x9c   : > { %s5521_s20 = scalar_lea.hbm %s5970_s9, %s3859_s29  ;;  %s467_s0 = sshll.u32 %s461_s27, 4  ;;  %s5523_s0 = int_to_ptr.vmem [resolvable:$true] %s467_s0 }
  0x9d   : > { %s5181_s2 = scalar_lea.hbm %s5521_s20, 32  ;;  %s5185_s26 = scalar_lea.hbm %s5970_s9, 160 }
  0x9e   : > { %p5182_p7 = scmp.ne.s32.totalorder %s5521_s20, %s5181_s2  ;;  %p5186_p1 = scmp.lt.s32.totalorder %s5521_s20, %s5970_s9 }
  0x9f   : > { %p5187_p3 = scmp.lt.s32.totalorder %s5185_s26, %s5181_s2 }
  0xa0   : > { %p5183_p11 = pnand %p5182_p7, %p5995_p13 }
  0xa1   : > { %p5188_p5 = por %p5187_p3, %p5186_p1 }
  0xa2   : > { %p5184_p0 = pneg %p5183_p11 }
  0xa4   : > { %p5189_p8 = pnand %p5188_p5, %p5184_p0 }
  0xa6   : > { %5192 = shalt.err (!%p5189_p8)
}
  0xa7   : > { %s5193_s15 = scalar_lea.vmem %s5523_s0, 32  ;;  %s5283_s29 = smov [#allocation16]  }
  0xa8   : > { %p5194_p9 = scmp.ne.s32.totalorder %s5523_s0, %s5193_s15  ;;  %s5197_s1 = sshll.u32 %s5283_s29, 4  ;;  %s5198_s1 = int_to_ptr.vmem [resolvable:$false] %s5197_s1 }
  0xa9   : > { %s5199_s19 = scalar_lea.vmem %s5198_s1, 64  ;;  %p5200_p4 = scmp.lt.s32.totalorder %s5523_s0, %s5198_s1 }
  0xaa   : > { %p5195_p10 = pnand %p5194_p9, %p5995_p13  ;;  %p5201_p6 = scmp.lt.s32.totalorder %s5199_s19, %s5193_s15 }
  0xac   : > { %p5196_p2 = pneg %p5195_p10  ;;  %p5202_p12 = por %p5201_p6, %p5200_p4 }
  0xae   : > { %p5203_p7 = pnand %p5202_p12, %p5196_p2 }
  0xb0   : > { %5206 = shalt.err (!%p5203_p7)
}
  0xb1   : > { %s5284_s2 = smov 80   ;;  %s5285_s27 = smov 16  }
  0xb2   : > { %s5286_s17 = smov 1   ;;  %476 = sbr.rel (!%p5995_p13) target bundleno = 199 (0xc7), region = 64 }
  0xb3   : > { %4566 = dma.hbm_to_vmem [thread:$0]  (%p5995_p13), %s5521_s20, 32, %s5523_s0, %s5493_s28, %s5284_s2, %s5285_s27, %s5286_s17  }
  0xb4   : > { %s3860_s16 = sshll.u32 (%p5995_p13), %s5482_s18, 8  ;;  %s4215_s26 = sshll.u32 (%p5995_p13), %s5261_s24, 7 }
  0xb5   : > { %s5553_s15 = scalar_lea.vmem (%p5995_p13), %s5971_s10, %s4215_s26  ;;  %s5558_s0 = scalar_lea.vmem (%p5995_p13), [#allocation17], %s3860_s16 }
  0xb6   : > { %v574_v0 = vld [vmem:[%s5553_s15] sm:$0xff] (%p5995_p13)  ;;  %v576_v1 = vld [vmem:[%s5553_s15 + $0x8] sm:$0xff] (%p5995_p13)  ;;  %v578_v2 = vld [vmem:[%s5553_s15 + $0x10] sm:$0xff] (%p5995_p13) }
  0xb7   : > { %575 = vst [vmem:[%s5558_s0] sm:$0xff] %v574_v0  ;;  %577 = vst [vmem:[%s5558_s0 + $0x8] sm:$0xff] %v576_v1  ;;  %v580_v3 = vld [vmem:[%s5553_s15 + $0x18] sm:$0xff]  ;;  %v582_v4 = vld [vmem:[%s5553_s15 + $0x20] sm:$0xff] }
  0xb8   : > { %579 = vst [vmem:[%s5558_s0 + $0x10] sm:$0xff] %v578_v2  ;;  %v584_v5 = vld [vmem:[%s5553_s15 + $0x28] sm:$0xff]  ;;  %581 = vst [vmem:[%s5558_s0 + $0x18] sm:$0xff] %v580_v3  ;;  %v586_v6 = vld [vmem:[%s5553_s15 + $0x30] sm:$0xff] }
  0xb9   : > { %583 = vst [vmem:[%s5558_s0 + $0x20] sm:$0xff] %v582_v4  ;;  %585 = vst [vmem:[%s5558_s0 + $0x28] sm:$0xff] %v584_v5  ;;  %v588_v7 = vld [vmem:[%s5553_s15 + $0x38] sm:$0xff]  ;;  %v590_v8 = vld [vmem:[%s5553_s15 + $0x40] sm:$0xff] }
  0xba   : > { %587 = vst [vmem:[%s5558_s0 + $0x30] sm:$0xff] %v586_v6  ;;  %589 = vst [vmem:[%s5558_s0 + $0x38] sm:$0xff] %v588_v7  ;;  %v592_v9 = vld [vmem:[%s5553_s15 + $0x48] sm:$0xff]  ;;  %v594_v10 = vld [vmem:[%s5553_s15 + $0x50] sm:$0xff] }
  0xbb   : > { %591 = vst [vmem:[%s5558_s0 + $0x40] sm:$0xff] %v590_v8  ;;  %v596_v11 = vld [vmem:[%s5553_s15 + $0x58] sm:$0xff]  ;;  %593 = vst [vmem:[%s5558_s0 + $0x48] sm:$0xff] %v592_v9  ;;  %v598_v12 = vld [vmem:[%s5553_s15 + $0x60] sm:$0xff] }
  0xbc   : > { %595 = vst [vmem:[%s5558_s0 + $0x50] sm:$0xff] %v594_v10  ;;  %597 = vst [vmem:[%s5558_s0 + $0x58] sm:$0xff] %v596_v11  ;;  %v600_v13 = vld [vmem:[%s5553_s15 + $0x68] sm:$0xff]  ;;  %v602_v14 = vld [vmem:[%s5553_s15 + $0x70] sm:$0xff] }
  0xbd   : > { %599 = vst [vmem:[%s5558_s0 + $0x60] sm:$0xff] %v598_v12  ;;  %601 = vst [vmem:[%s5558_s0 + $0x68] sm:$0xff] %v600_v13  ;;  %v604_v15 = vld [vmem:[%s5553_s15 + $0x78] sm:$0xff]  ;;  %v606_v16 = vld [vmem:[%s5553_s15 + $0x280] sm:$0xff] }
  0xbe   : > { %603 = vst [vmem:[%s5558_s0 + $0x70] sm:$0xff] %v602_v14  ;;  %v608_v17 = vld [vmem:[%s5553_s15 + $0x288] sm:$0xff]  ;;  %605 = vst [vmem:[%s5558_s0 + $0x78] sm:$0xff] %v604_v15  ;;  %v610_v18 = vld [vmem:[%s5553_s15 + $0x290] sm:$0xff] }
  0xbf   : > { %607 = vst [vmem:[%s5558_s0 + $0x80] sm:$0xff] %v606_v16  ;;  %609 = vst [vmem:[%s5558_s0 + $0x88] sm:$0xff] %v608_v17  ;;  %v612_v19 = vld [vmem:[%s5553_s15 + $0x298] sm:$0xff]  ;;  %v614_v20 = vld [vmem:[%s5553_s15 + $0x2a0] sm:$0xff] }
  0xc0   : > { %611 = vst [vmem:[%s5558_s0 + $0x90] sm:$0xff] %v610_v18  ;;  %613 = vst [vmem:[%s5558_s0 + $0x98] sm:$0xff] %v612_v19  ;;  %v616_v21 = vld [vmem:[%s5553_s15 + $0x2a8] sm:$0xff]  ;;  %v618_v22 = vld [vmem:[%s5553_s15 + $0x2b0] sm:$0xff] }
  0xc1   : > { %615 = vst [vmem:[%s5558_s0 + $0xa0] sm:$0xff] %v614_v20  ;;  %v620_v23 = vld [vmem:[%s5553_s15 + $0x2b8] sm:$0xff]  ;;  %617 = vst [vmem:[%s5558_s0 + $0xa8] sm:$0xff] %v616_v21  ;;  %v622_v24 = vld [vmem:[%s5553_s15 + $0x2c0] sm:$0xff] }
  0xc2   : > { %619 = vst [vmem:[%s5558_s0 + $0xb0] sm:$0xff] %v618_v22  ;;  %621 = vst [vmem:[%s5558_s0 + $0xb8] sm:$0xff] %v620_v23  ;;  %v624_v25 = vld [vmem:[%s5553_s15 + $0x2c8] sm:$0xff]  ;;  %v626_v26 = vld [vmem:[%s5553_s15 + $0x2d0] sm:$0xff] }
  0xc3   : > { %623 = vst [vmem:[%s5558_s0 + $0xc0] sm:$0xff] %v622_v24  ;;  %625 = vst [vmem:[%s5558_s0 + $0xc8] sm:$0xff] %v624_v25  ;;  %v628_v27 = vld [vmem:[%s5553_s15 + $0x2d8] sm:$0xff]  ;;  %v630_v28 = vld [vmem:[%s5553_s15 + $0x2e0] sm:$0xff] }
  0xc4   : > { %627 = vst [vmem:[%s5558_s0 + $0xd0] sm:$0xff] %v626_v26  ;;  %v632_v29 = vld [vmem:[%s5553_s15 + $0x2e8] sm:$0xff]  ;;  %629 = vst [vmem:[%s5558_s0 + $0xd8] sm:$0xff] %v628_v27  ;;  %v634_v30 = vld [vmem:[%s5553_s15 + $0x2f0] sm:$0xff] }
  0xc5   : > { %631 = vst [vmem:[%s5558_s0 + $0xe0] sm:$0xff] %v630_v28  ;;  %633 = vst [vmem:[%s5558_s0 + $0xe8] sm:$0xff] %v632_v29  ;;  %v636_v31 = vld [vmem:[%s5553_s15 + $0x2f8] sm:$0xff] }
  0xc6   : > { %635 = vst [vmem:[%s5558_s0 + $0xf0] sm:$0xff] %v634_v30  ;;  %637 = vst [vmem:[%s5558_s0 + $0xf8] sm:$0xff] %v636_v31 }
  0xc7 PF: > { %p5996_p13 = scmp.ne.s32.totalorder %s5990_s14, 0 }
  0xc8   : > { %p5997_p11 = scmp.eq.s32.totalorder (!%p5996_p13), %s5376_s25, 0 }
  0xc9   : > { %646 = sbr.rel (%p5996_p13) target bundleno = 1444 (0x5a4), region = 102 }
  0xce   : > { %5224 = dma.done.wait (%p5997_p11), [#allocation4], 128   ;;  %p5998_p0 = pmov %p5997_p11 }
  0xd0   : > { %5226 = vsyncadd (%p5998_p0), [#allocation4], 4294967168  ;;  %p5999_p1 = pmov %p5998_p0 }
  0xd1   : > { %p6000_p3 = pmov %p5998_p0 }
  0xd2   : > { %5228 = dma.done.wait (%p5999_p1), [#allocation6], 816  }
  0xd3   : > { %5230 = vsyncadd (%p6000_p3), [#allocation6], 4294966480  ;;  %p6001_p5 = pmov %p5998_p0 }
  0xd4   : > { %p6002_p8 = pmov %p5998_p0 }
  0xd5   : > { %5232 = dma.done.wait (%p6001_p5), [#allocation9], 15440  }
  0xd6   : > { %5234 = vsyncadd (%p6002_p8), [#allocation9], 4294951856  ;;  %p6003_p9 = pmov %p5998_p0 }
  0xd7   : > { %p6004_p10 = pmov %p5998_p0 }
  0xd8   : > { %5236 = dma.done.wait (%p6003_p9), [#allocation12], 800  }
  0xd9   : > { %5238 = vsyncadd (%p6004_p10), [#allocation12], 4294966496  ;;  %s676_s24 = sand.u32 1, %s5376_s25   ;;  %s678_s30 = sand.u32 1, %s5253_s22  }
  0xda   : > { %s4548_s14 = smul.u32 640, %s678_s30  ;;  %s677_s18 = scalar_lea.sflag [#allocation15], %s676_s24 }
  0xdb   : > { %p6005_p2 = scmp.ne.s32.totalorder %s5989_s13, 0 }
  0xdc   : > { %s5641_s28 = scalar_lea.vmem [#allocation14], %s4548_s14 }
  0xdd   : > { %5240 = dma.done.wait (%p6005_p2), %s677_s18, 10272  }
  0xde   : > { %5242 = vsyncadd (%p6005_p2), %s677_s18, 4294957024  ;;  %s3871_s20 = sshll.u32 %s678_s30, 1  ;;  %s3872_s29 = sshll.u32 %s678_s30, 8 }
  0xdf   : > { %s5647_s1 = scalar_lea.vmem [#allocation16], %s3871_s20  ;;  %s5649_s19 = scalar_lea.vmem [#allocation17], %s3872_s29 }
  0xe0   : > { %p6006_p4 = pmov %p5998_p0 }
  0xe1   : > { %p6007_p6 = pmov %p5998_p0 }
  0xe2   : > { %5244 = dma.done.wait (%p6006_p4), [#allocation19], 32  }
  0xe3   : > { %5246 = vsyncadd (%p6007_p6), [#allocation19], 4294967264  ;;  %p6008_p12 = scmp.ne.s32.totalorder %s5376_s25, 0 }
  0xe4   : > { %s6009_s2 = sld [smem:[#allocation31_spill]] (!%p6008_p12) }
  0xe5   : > { %750 = sbr.rel (%p6008_p12) target bundleno = 751 (0x2ef), region = 150  ;;  %s6010_s12 = sld [smem:[#allocation29_spill]] (!%p6008_p12) }
  0xea   : > { %v756_v32 = vld [vmem:[#allocation5 + $0x20] sm:$0xff]  ;;  %v755_v33 = vld [vmem:[#allocation5 + $0x18] sm:$0xff]  ;;  %v757_v34 = vld [vmem:[#allocation5 + $0x28] sm:$0xff]  ;;  %v5287_v35 = vmov 0.0   ;;  %vm775_vm0 = vcmask 130048   ;;  %vm5288_vm1 = vmmov 0   ;;  %v760_v29 = vlaneseq }
  0xeb   : > { %807 = vmatprep.subr.mxu0 %v756_v32  ;;  %4400 = vmatprep.subr.mxu1 %v5287_v35  ;;  %v753_v36 = vld [vmem:[#allocation5 + $0x8] sm:$0xff]  ;;  %v752_v37 = vld [vmem:[#allocation5] sm:$0xff]  ;;  %v754_v38 = vld [vmem:[#allocation5 + $0x10] sm:$0xff]  ;;  %v5289_v25 = vmov 0   ;;  %vm2001_vm2 = vcmask 31744   ;;  %vm2005_vm3 = vcmask 1043456  }
  0xec   : > { %808 = vmatpush1.msra.mxu0 %v755_v33  ;;  %4401 = vmatpush3.msra.mxu1 %v757_v34  ;;  %v751_v39 = vld [vmem:[#allocation3] sm:$0xff]  ;;  %v4687_v40 = vld [vmem:[#allocation8 + $0x11c] ss:$20 sps:$4 sm:$0xff]   ;;  %v4685_v41 = vld [vmem:[#allocation8 + $0x118] ss:$20 sps:$4 sm:$0xff]   ;;  %v5670_v30 = vshrl.u32 %v760_v29, 7 }
  0xed   : > { %809 = vmatprep.subr.mxu0 %v753_v36  ;;  %4402 = vmatprep.subr.mxu1 %v5287_v35  ;;  %v4690_v42 = vld [vmem:[#allocation8 + $0xf4] ss:$20 sps:$4 sm:$0xff]   ;;  %v4688_v43 = vld [vmem:[#allocation8 + $0xf0] ss:$20 sps:$4 sm:$0xff]   ;;  %v4693_v44 = vld [vmem:[#allocation8 + $0xcc] ss:$20 sps:$4 sm:$0xff]  }
  0xee   : > { %810 = vmatpush1.msra.mxu0 %v752_v37  ;;  %843 = vmatprep.mubr.f32.mxu0 %v5287_v35  ;;  %v4691_v45 = vld [vmem:[#allocation8 + $0xc8] ss:$20 sps:$4 sm:$0xff]   ;;  %v4696_v46 = vld [vmem:[#allocation8 + $0xa4] ss:$20 sps:$4 sm:$0xff]   ;;  %v4694_v49 = vld [vmem:[#allocation8 + $0xa0] ss:$20 sps:$4 sm:$0xff]  }
  0xef   : > { %4403 = vmatpush3.msra.mxu1 %v754_v38  ;;  %4404 = vmatprep.mubr.msk.f32.mxu1 %vm5288_vm1, %v5287_v35  ;;  %v4709_v47 = vld [vmem:[#allocation8 + $0x398] ss:$20 sps:$4 sm:$0xff]   ;;  %v4711_v48 = vld [vmem:[#allocation8 + $0x39c] ss:$20 sps:$4 sm:$0xff]   ;;  %v4717_v51 = vld [vmem:[#allocation8 + $0x374] ss:$20 sps:$4 sm:$0xff]  }
  0xf0   : > { %3875 = vmatmul.mubr.msk.f32.vlgmr.msra.gmra.mxu0 %vm775_vm0, %v751_v39  ;;  %4405 = vmatmul.mubr.msk.f32.vlgmr.msra.gmra.mxu1 %vm775_vm0, %v751_v39  ;;  %v4699_v50 = vld [vmem:[#allocation8 + $0x7c] ss:$20 sps:$4 sm:$0xff]   ;;  %v4723_v53 = vld [vmem:[#allocation8 + $0x34c] ss:$20 sps:$4 sm:$0xff]   ;;  %v4702_v55 = vld [vmem:[#allocation8 + $0x54] ss:$20 sps:$4 sm:$0xff]  }
  0xf1   : > { %1721 = vmatprep.subr.bf16.mxu0 %v4687_v40  ;;  %1762 = vmatprep.subr.bf16.mxu1 %v4711_v48  ;;  %v4715_v52 = vld [vmem:[#allocation8 + $0x370] ss:$20 sps:$4 sm:$0xff]   ;;  %v4697_v54 = vld [vmem:[#allocation8 + $0x78] ss:$20 sps:$4 sm:$0xff]   ;;  %v4721_v56 = vld [vmem:[#allocation8 + $0x348] ss:$20 sps:$4 sm:$0xff]  }
  0xf2   : > { %1722 = vmatpush1.bf16.msra.mxu0 %v4685_v41  ;;  %1763 = vmatpush1.bf16.msra.mxu1 %v4709_v47  ;;  %v4729_v57 = vld [vmem:[#allocation8 + $0x324] ss:$20 sps:$4 sm:$0xff]   ;;  %v4705_v59 = vld [vmem:[#allocation8 + $0x2c] ss:$20 sps:$4 sm:$0xff]   ;;  %v4735_v61 = vld [vmem:[#allocation8 + $0x2fc] ss:$20 sps:$4 sm:$0xff]  }
  0xf3   : > { %1723 = vmatprep.subr.bf16.mxu0 %v4690_v42  ;;  %1764 = vmatprep.subr.bf16.mxu1 %v4717_v51  ;;  %v4700_v58 = vld [vmem:[#allocation8 + $0x50] ss:$20 sps:$4 sm:$0xff]   ;;  %v4727_v60 = vld [vmem:[#allocation8 + $0x320] ss:$20 sps:$4 sm:$0xff]   ;;  %v4703_v62 = vld [vmem:[#allocation8 + $0x28] ss:$20 sps:$4 sm:$0xff]  }
  0xf4   : > { %v4708_v63 = vld [vmem:[#allocation8 + $0x4] ss:$20 sps:$4 sm:$0xff]   ;;  %v4706_v1 = vld [vmem:[#allocation8] ss:$20 sps:$4 sm:$0xff]   ;;  %v4714_v3 = vld [vmem:[#allocation8 + $0x25c] ss:$20 sps:$4 sm:$0xff]   ;;  %1794 = vmatprep.mubr.bf16.mxu1 %v5289_v25 }
  0xf5   : > { %v4733_v0 = vld [vmem:[#allocation8 + $0x2f8] ss:$20 sps:$4 sm:$0xff]   ;;  %v4741_v2 = vld [vmem:[#allocation8 + $0x2d4] ss:$20 sps:$4 sm:$0xff]   ;;  %v4739_v4 = vld [vmem:[#allocation8 + $0x2d0] ss:$20 sps:$4 sm:$0xff]  }
  0xf6   : > { %1724 = vmatpush1.bf16.msra.mxu0 %v4688_v43  ;;  %1765 = vmatpush1.bf16.msra.mxu1 %v4715_v52  ;;  %v4747_v5 = vld [vmem:[#allocation8 + $0x2ac] ss:$20 sps:$4 sm:$0xff]   ;;  %v4720_v7 = vld [vmem:[#allocation8 + $0x234] ss:$20 sps:$4 sm:$0xff]   ;;  %v4718_v9 = vld [vmem:[#allocation8 + $0x230] ss:$20 sps:$4 sm:$0xff]  }
  0xf7   : > { %1725 = vmatprep.subr.bf16.mxu0 %v4693_v44  ;;  %1766 = vmatprep.subr.bf16.mxu1 %v4723_v53  ;;  %v4712_v6 = vld [vmem:[#allocation8 + $0x258] ss:$20 sps:$4 sm:$0xff]   ;;  %v4745_v8 = vld [vmem:[#allocation8 + $0x2a8] ss:$20 sps:$4 sm:$0xff]   ;;  %v4730_v13 = vld [vmem:[#allocation8 + $0x1e0] ss:$20 sps:$4 sm:$0xff]  }
  0xf8   : > { %v4726_v10 = vld [vmem:[#allocation8 + $0x20c] ss:$20 sps:$4 sm:$0xff]   ;;  %v4724_v11 = vld [vmem:[#allocation8 + $0x208] ss:$20 sps:$4 sm:$0xff]   ;;  %v4732_v12 = vld [vmem:[#allocation8 + $0x1e4] ss:$20 sps:$4 sm:$0xff]  }
  0xf9   : > { %v4738_v14 = vld [vmem:[#allocation8 + $0x1bc] ss:$20 sps:$4 sm:$0xff]   ;;  %v4736_v15 = vld [vmem:[#allocation8 + $0x1b8] ss:$20 sps:$4 sm:$0xff]   ;;  %v4744_v16 = vld [vmem:[#allocation8 + $0x194] ss:$20 sps:$4 sm:$0xff]  }
  0xfa   : > { %1726 = vmatpush1.bf16.msra.mxu0 %v4691_v45  ;;  %1767 = vmatpush1.bf16.msra.mxu1 %v4721_v56  ;;  %v4742_v17 = vld [vmem:[#allocation8 + $0x190] ss:$20 sps:$4 sm:$0xff]   ;;  %v4750_v18 = vld [vmem:[#allocation8 + $0x16c] ss:$20 sps:$4 sm:$0xff]   ;;  %v4748_v19 = vld [vmem:[#allocation8 + $0x168] ss:$20 sps:$4 sm:$0xff]  }
  0xfb   : > { %1727 = vmatprep.subr.bf16.mxu0 %v4696_v46  ;;  %1768 = vmatprep.subr.bf16.mxu1 %v4729_v57  ;;  %v4753_v20 = vld [vmem:[#allocation8 + $0x284] ss:$20 sps:$4 sm:$0xff]   ;;  %v4751_v21 = vld [vmem:[#allocation8 + $0x280] ss:$20 sps:$4 sm:$0xff]   ;;  %v4008_v27 = vld [vmem:[#allocation18] ss:$0 sm:$0xff] }
  0xfc   : > { %v4756_v22 = vld [vmem:[#allocation8 + $0x144] ss:$20 sps:$4 sm:$0xff]   ;;  %v4754_v23 = vld [vmem:[#allocation8 + $0x140] ss:$20 sps:$4 sm:$0xff]   ;;  %v4020_v28 = vld [vmem:[#allocation18 + $0x1] ss:$0 sm:$0xff] }
  0xfd   : > { %v4759_v24 = vld [vmem:[#allocation8 + $0x124] ss:$20 sps:$4 sm:$0xff]   ;;  %2264 = vst.msk [vmem:[%s6009_s2] sm:$0xff] %vm2001_vm2, %v4008_v27  ;;  %4021 = vst.msk [vmem:[%s6009_s2 + $0x8] sm:$0xff] %vm2001_vm2, %v4020_v28  ;;  %v5673_v31 = vsub.s32 0, %v5670_v30  ;;  %v5676_v32 = vsub.s32 2, %v5670_v30 }
  0xfe   : > { %1728 = vmatpush1.bf16.msra.mxu0 %v4694_v49  ;;  %1769 = vmatpush1.bf16.msra.mxu1 %v4727_v60  ;;  %v4762_v26 = vld [vmem:[#allocation8 + $0x3a4] ss:$20 sps:$4 sm:$0xff]   ;;  %v758_v33 = vld [vmem:[#allocation7] sm:$0x7]  ;;  %v5679_v34 = vsub.s32 1, %v5670_v30 }
  0xff   : > { %1729 = vmatprep.subr.bf16.mxu0 %v4699_v50  ;;  %1770 = vmatprep.subr.bf16.mxu1 %v4735_v61  ;;  %v763_v36 = vrot.slane %v758_v33, %v5673_v31  ;;  %v771_v37 = vrot.slane %v758_v33, %v5676_v32  ;;  %v4757_v48 = vld [vmem:[#allocation8 + $0x120] ss:$20 sps:$4 sm:$0xff]   ;;  %v4765_v51 = vld [vmem:[#allocation8 + $0xfc] ss:$20 sps:$4 sm:$0xff]   ;;  %v4818_v28 = vld [vmem:[#allocation8 + $0x218] ss:$20 sps:$4 sm:$0xff]  }
 0x100   : > { %v767_v38 = vrot.slane %v758_v33, %v5679_v34  ;;  %v4768_v56 = vld [vmem:[#allocation8 + $0x37c] ss:$20 sps:$4 sm:$0xff]   ;;  %v4771_v57 = vld [vmem:[#allocation8 + $0xd4] ss:$20 sps:$4 sm:$0xff]   ;;  %v4777_v61 = vld [vmem:[#allocation8 + $0xac] ss:$20 sps:$4 sm:$0xff]  }
 0x101   : > { %v4774_v60 = vld [vmem:[#allocation8 + $0x354] ss:$20 sps:$4 sm:$0xff]   ;;  %v4814_v27 = vld [vmem:[#allocation8 + $0x210] ss:$20 sps:$4 sm:$0xff]   ;;  %v4821_v29 = vld [vmem:[#allocation8 + $0x1ec] ss:$20 sps:$4 sm:$0xff]  }
 0x102   : > { %1730 = vmatpush1.bf16.msra.mxu0 %v4697_v54  ;;  %1771 = vmatpush1.bf16.msra.mxu1 %v4733_v0  ;;  %v4760_v54 = vld [vmem:[#allocation8 + $0x3a0] ss:$20 sps:$4 sm:$0xff]   ;;  %v4822_v33 = vld [vmem:[#allocation8 + $0xd8] ss:$20 sps:$4 sm:$0xff]  }
 0x103   : > { %1731 = vmatprep.subr.bf16.mxu0 %v4702_v55  ;;  %1772 = vmatprep.subr.bf16.mxu1 %v4741_v2  ;;  %v4763_v55 = vld [vmem:[#allocation8 + $0xf8] ss:$20 sps:$4 sm:$0xff]   ;;  %v4778_v2 = vld [vmem:[#allocation8 + $0x328] ss:$20 sps:$4 sm:$0xff]  }
 0x104   : > { %v4780_v0 = vld [vmem:[#allocation8 + $0x32c] ss:$20 sps:$4 sm:$0xff]  }
 0x106   : > { %1732 = vmatpush1.bf16.msra.mxu0 %v4700_v58  ;;  %1773 = vmatpush1.bf16.msra.mxu1 %v4739_v4  ;;  %v4766_v58 = vld [vmem:[#allocation8 + $0x378] ss:$20 sps:$4 sm:$0xff]  }
 0x107   : > { %1733 = vmatprep.subr.bf16.mxu0 %v4705_v59  ;;  %1774 = vmatprep.subr.bf16.mxu1 %v4747_v5  ;;  %v4769_v59 = vld [vmem:[#allocation8 + $0xd0] ss:$20 sps:$4 sm:$0xff]  }
 0x108   : > { %v4786_v4 = vld [vmem:[#allocation8 + $0x304] ss:$20 sps:$4 sm:$0xff]   ;;  %v4789_v5 = vld [vmem:[#allocation8 + $0x5c] ss:$20 sps:$4 sm:$0xff]  }
 0x10a   : > { %1734 = vmatpush1.bf16.msra.mxu0 %v4703_v62  ;;  %1775 = vmatpush1.bf16.msra.mxu1 %v4745_v8  ;;  %v4772_v62 = vld [vmem:[#allocation8 + $0x350] ss:$20 sps:$4 sm:$0xff]  }
 0x10b   : > { %1735 = vmatprep.subr.bf16.mxu0 %v4708_v63  ;;  %1776 = vmatprep.subr.bf16.mxu1 %v4753_v20  ;;  %v4775_v63 = vld [vmem:[#allocation8 + $0xa8] ss:$20 sps:$4 sm:$0xff]  }
 0x10c   : > { %v4792_v8 = vld [vmem:[#allocation8 + $0x2dc] ss:$20 sps:$4 sm:$0xff]  }
 0x10d   : > { %v4808_v20 = vld [vmem:[#allocation8 + $0x268] ss:$20 sps:$4 sm:$0xff]  }
 0x10e   : > { %1736 = vmatpush1.bf16.msra.mxu0 %v4706_v1  ;;  %1777 = vmatpush1.bf16.msra.mxu1 %v4751_v21  ;;  %v4783_v1 = vld [vmem:[#allocation8 + $0x84] ss:$20 sps:$4 sm:$0xff]   ;;  %v4811_v21 = vld [vmem:[#allocation8 + $0x23c] ss:$20 sps:$4 sm:$0xff]  }
 0x10f   : > { %1737 = vmatprep.subr.bf16.mxu0 %v4714_v3  ;;  %1803 = vmatprep.subr.bf16.mxu1 %v4759_v24  ;;  %v4781_v3 = vld [vmem:[#allocation8 + $0x80] ss:$20 sps:$4 sm:$0xff]  }
 0x110   : > { %v4813_v24 = vld [vmem:[#allocation8 + $0x240] ss:$20 sps:$4 sm:$0xff]  }
 0x112   : > { %1738 = vmatpush2.bf16.msra.mxu0 %v4712_v6  ;;  %v4784_v6 = vld [vmem:[#allocation8 + $0x300] ss:$20 sps:$4 sm:$0xff]  }
 0x113   : > { %1739 = vmatprep.subr.bf16.mxu0 %v4720_v7  ;;  %v4787_v7 = vld [vmem:[#allocation8 + $0x58] ss:$20 sps:$4 sm:$0xff]  }
 0x116   : > { %1740 = vmatpush2.bf16.msra.mxu0 %v4718_v9  ;;  %v4795_v9 = vld [vmem:[#allocation8 + $0x34] ss:$20 sps:$4 sm:$0xff]  }
 0x117   : > { %1741 = vmatprep.subr.bf16.mxu0 %v4726_v10  ;;  %v4790_v10 = vld [vmem:[#allocation8 + $0x2d8] ss:$20 sps:$4 sm:$0xff]  }
 0x11a   : > { %1742 = vmatpush2.bf16.msra.mxu0 %v4724_v11  ;;  %v4793_v11 = vld [vmem:[#allocation8 + $0x30] ss:$20 sps:$4 sm:$0xff]  }
 0x11b   : > { %1743 = vmatprep.subr.bf16.mxu0 %v4732_v12  ;;  %v4798_v12 = vld [vmem:[#allocation8 + $0x2b4] ss:$20 sps:$4 sm:$0xff]  }
 0x11e   : > { %1744 = vmatpush2.bf16.msra.mxu0 %v4730_v13  ;;  %v4801_v13 = vld [vmem:[#allocation8 + $0xc] ss:$20 sps:$4 sm:$0xff]  }
 0x11f   : > { %1745 = vmatprep.subr.bf16.mxu0 %v4738_v14  ;;  %v4796_v14 = vld [vmem:[#allocation8 + $0x2b0] ss:$20 sps:$4 sm:$0xff]  }
 0x122   : > { %1746 = vmatpush2.bf16.msra.mxu0 %v4736_v15  ;;  %v4799_v15 = vld [vmem:[#allocation8 + $0x8] ss:$20 sps:$4 sm:$0xff]  }
 0x123   : > { %1747 = vmatprep.subr.bf16.mxu0 %v4744_v16  ;;  %v4804_v16 = vld [vmem:[#allocation8 + $0x28c] ss:$20 sps:$4 sm:$0xff]  }
 0x126   : > { %1748 = vmatpush2.bf16.msra.mxu0 %v4742_v17  ;;  %v4807_v17 = vld [vmem:[#allocation8 + $0x264] ss:$20 sps:$4 sm:$0xff]  }
 0x127   : > { %1749 = vmatprep.subr.bf16.mxu0 %v4750_v18  ;;  %v4802_v18 = vld [vmem:[#allocation8 + $0x288] ss:$20 sps:$4 sm:$0xff]  }
 0x12a   : > { %1750 = vmatpush2.bf16.msra.mxu0 %v4748_v19  ;;  %v4805_v19 = vld [vmem:[#allocation8 + $0x260] ss:$20 sps:$4 sm:$0xff]  }
 0x12b   : > { %1751 = vmatprep.subr.bf16.mxu0 %v4756_v22  ;;  %v4812_v22 = vld [vmem:[#allocation8 + $0x128] ss:$20 sps:$4 sm:$0xff]  }
 0x12e   : > { %1752 = vmatpush2.bf16.msra.mxu0 %v4754_v23  ;;  %v4809_v23 = vld [vmem:[#allocation8 + $0x238] ss:$20 sps:$4 sm:$0xff]  }
 0x12f   : > { %1844 = vmatprep.subr.bf16.mxu0 %v4762_v26  ;;  %v4817_v26 = vld [vmem:[#allocation8 + $0x100] ss:$20 sps:$4 sm:$0xff]  }
 0x1b0   : > { %v845_v39 = vpop.f32.mrf.mxu0  ;;  %v916_v40 = vpop.f32.mrf.mxu1 }
 0x1b1   : > { %v846_v41 = vadd.f32 %v845_v39, %v763_v36  ;;  %v917_v42 = vadd.f32 %v916_v40, %v771_v37  ;;  %v4819_v36 = vld [vmem:[#allocation8 + $0x1e8] ss:$20 sps:$4 sm:$0xff]   ;;  %v4823_v37 = vld [vmem:[#allocation8 + $0x1f0] ss:$20 sps:$4 sm:$0xff]   ;;  %v4824_v40 = vld [vmem:[#allocation8 + $0x1c0] ss:$20 sps:$4 sm:$0xff]  }
 0x1b2   : > { %v847_v43 = vpop.f32.mrf.mxu0  ;;  %v4406_v44 = vpop.f32.mrf.mxu1  ;;  %v4827_v39 = vld [vmem:[#allocation8 + $0xb0] ss:$20 sps:$4 sm:$0xff]  }
 0x1b3   : > { %v920_v45 = vmax.f32 %v846_v41, 0.0  ;;  %v922_v46 = vmax.f32 %v917_v42, 0.0  ;;  %v848_v47 = vadd.f32 %v847_v43, %v767_v38  ;;  %v4826_v38 = vld [vmem:[#allocation8 + $0x1c4] ss:$20 sps:$4 sm:$0xff]   ;;  %v4828_v41 = vld [vmem:[#allocation8 + $0x1c8] ss:$20 sps:$4 sm:$0xff]  }
 0x1b4   : > { %v4831_v42 = vld [vmem:[#allocation8 + $0x19c] ss:$20 sps:$4 sm:$0xff]   ;;  %v4829_v44 = vld [vmem:[#allocation8 + $0x198] ss:$20 sps:$4 sm:$0xff]  }
 0x1b5   : > { %v5684_v49 = vpack.c.bf16 %v922_v46, %v922_v46  ;;  %v921_v50 = vmax.f32 %v848_v47, 0.0  ;;  %v5686_v52 = vpack.c.bf16 %v920_v45, %v920_v45  ;;  %v4832_v43 = vld [vmem:[#allocation8 + $0x88] ss:$20 sps:$4 sm:$0xff]   ;;  %v4833_v45 = vld [vmem:[#allocation8 + $0x1a0] ss:$20 sps:$4 sm:$0xff]  }
 0x1b6   : > { %v4836_v46 = vld [vmem:[#allocation8 + $0x174] ss:$20 sps:$4 sm:$0xff]  }
 0x1b7   : > { %v5688_v53 = vpack.c.bf16 %v921_v50, %v921_v50  ;;  %1795 = vmatmul.mubr.bf16.vlgmr.msra.gmra.mxu1 %v5684_v49  ;;  %v4837_v47 = vld [vmem:[#allocation8 + $0x60] ss:$20 sps:$4 sm:$0xff]   ;;  %v4838_v50 = vld [vmem:[#allocation8 + $0x178] ss:$20 sps:$4 sm:$0xff]  }
 0x1b8   : > { %1804 = vmatpush1.bf16.msra.mxu1 %v4757_v48  ;;  %v4834_v48 = vld [vmem:[#allocation8 + $0x170] ss:$20 sps:$4 sm:$0xff]  }
 0x1b9   : > { %1753 = vmatprep.mubr.bf16.mxu0 %v5688_v53  ;;  %1805 = vmatprep.subr.bf16.mxu1 %v4765_v51  ;;  %v4841_v51 = vld [vmem:[#allocation8 + $0x14c] ss:$20 sps:$4 sm:$0xff]  }
 0x1ba   : > { %1754 = vmatmul.mubr.bf16.vlgmr.msra.gmra.mxu0 %v5686_v52  ;;  %1835 = vmatprep.mubr.bf16.mxu1 %v5688_v53 }
 0x1bb   : > { %1845 = vmatpush1.bf16.msra.mxu0 %v4760_v54  ;;  %1876 = vmatprep.mubr.bf16.mxu0 %v5289_v25  ;;  %v4816_v25 = vld [vmem:[#allocation8 + $0x214] ss:$20 sps:$4 sm:$0xff]  }
 0x1bc   : > { %1806 = vmatpush1.bf16.msra.mxu1 %v4763_v55  ;;  %1846 = vmatprep.subr.bf16.mxu0 %v4768_v56  ;;  %v4839_v54 = vld [vmem:[#allocation8 + $0x148] ss:$20 sps:$4 sm:$0xff]   ;;  %v4843_v55 = vld [vmem:[#allocation8 + $0x150] ss:$20 sps:$4 sm:$0xff]  }
 0x1bd   : > { %1807 = vmatprep.subr.bf16.mxu1 %v4771_v57  ;;  %v1966_v56 = vld [vmem:[#allocation11] sm:$0xff] }
 0x1be   : > { %v4844_v57 = vld [vmem:[#allocation8 + $0x10] ss:$20 sps:$4 sm:$0xff]  }
 0x1bf   : > { %1847 = vmatpush1.bf16.msra.mxu0 %v4766_v58  ;;  %v4845_v58 = vld [vmem:[#allocation8 + $0x3a8] ss:$20 sps:$4 sm:$0xff]  }
 0x1c0   : > { %1808 = vmatpush1.bf16.msra.mxu1 %v4769_v59  ;;  %1848 = vmatprep.subr.bf16.mxu0 %v4774_v60  ;;  %v1999_v59 = vcombine.high %v1966_v56, %v1966_v56  ;;  %v4846_v60 = vld [vmem:[#allocation8 + $0x380] ss:$20 sps:$4 sm:$0xff]  }
 0x1c1   : > { %1809 = vmatprep.subr.bf16.mxu1 %v4777_v61  ;;  %v4847_v61 = vld [vmem:[#allocation8 + $0x358] ss:$20 sps:$4 sm:$0xff]  }
 0x1c3   : > { %1849 = vmatpush1.bf16.msra.mxu0 %v4772_v62  ;;  %v2268_v62 = vld [vmem:[#allocation11 + $0x1c] sm:$0xff] }
 0x1c4   : > { %1810 = vmatpush1.bf16.msra.mxu1 %v4775_v63  ;;  %1850 = vmatprep.subr.bf16.mxu0 %v4780_v0  ;;  %v1965_v63 = vld [vmem:[%s6010_s12] sm:$0xff]  ;;  %v4849_v0 = vld [vmem:[#allocation8 + $0x330] ss:$20 sps:$4 sm:$0xff]  }
 0x1c5   : > { %1811 = vmatprep.subr.bf16.mxu1 %v4783_v1  ;;  %v1968_v1 = vld [vmem:[#allocation11 + $0x10] sm:$0xf] }
 0x1c7   : > { %1851 = vmatpush1.bf16.msra.mxu0 %v4778_v2  ;;  %v2302_v2 = vcombine.high %v2268_v62, %v2268_v62 }
 0x1c8   : > { %1812 = vmatpush1.bf16.msra.mxu1 %v4781_v3  ;;  %1852 = vmatprep.subr.bf16.mxu0 %v4786_v4  ;;  %v4852_v3 = vld [vmem:[#allocation8 + $0x2e0] ss:$20 sps:$4 sm:$0xff]   ;;  %v4853_v4 = vld [vmem:[#allocation8 + $0x2b8] ss:$20 sps:$4 sm:$0xff]  }
 0x1c9   : > { %1813 = vmatprep.subr.bf16.mxu1 %v4789_v5  ;;  %v1967_v5 = vld [vmem:[#allocation11 + $0x8] sm:$0xff] }
 0x1cb   : > { %1853 = vmatpush1.bf16.msra.mxu0 %v4784_v6  ;;  %v4854_v6 = vld [vmem:[#allocation8 + $0x290] ss:$20 sps:$4 sm:$0xff]  }
 0x1cc   : > { %1814 = vmatpush1.bf16.msra.mxu1 %v4787_v7  ;;  %1854 = vmatprep.subr.bf16.mxu0 %v4792_v8  ;;  %v2000_v7 = vcombine.high %v1967_v5, %v1967_v5  ;;  %v2267_v8 = vld [vmem:[#allocation11 + $0x14] sm:$0xff] }
 0x1cd   : > { %1815 = vmatprep.subr.bf16.mxu1 %v4795_v9  ;;  %v2301_v9 = vcombine.high %v2267_v8, %v2267_v8 }
 0x1cf   : > { %1855 = vmatpush1.bf16.msra.mxu0 %v4790_v10  ;;  %v2269_v10 = vld [vmem:[#allocation11 + $0x24] sm:$0xf] }
 0x1d0   : > { %1816 = vmatpush1.bf16.msra.mxu1 %v4793_v11  ;;  %1856 = vmatprep.subr.bf16.mxu0 %v4798_v12 }
 0x1d1   : > { %1817 = vmatprep.subr.bf16.mxu1 %v4801_v13 }
 0x1d3   : > { %1857 = vmatpush1.bf16.msra.mxu0 %v4796_v14 }
 0x1d4   : > { %1818 = vmatpush1.bf16.msra.mxu1 %v4799_v15  ;;  %1858 = vmatprep.subr.bf16.mxu0 %v4804_v16 }
 0x1d5   : > { %1819 = vmatprep.subr.bf16.mxu1 %v4807_v17 }
 0x1d7   : > { %1859 = vmatpush1.bf16.msra.mxu0 %v4802_v18 }
 0x1d8   : > { %1820 = vmatpush2.bf16.msra.mxu1 %v4805_v19  ;;  %4225 = vmatprep.subr.bf16.mxu0 %v4808_v20 }
 0x1d9   : > { %1821 = vmatprep.subr.bf16.mxu1 %v4811_v21 }
 0x1da   : > { %1877 = vmatmul.mubr.bf16.vlgmr.msra.gmra.mxu0 %v5684_v49 }
 0x1db   : > { %4226 = vmatpush3.bf16.msra.mxu0 %v4812_v22  ;;  %1917 = vmatprep.mubr.bf16.mxu0 %v5688_v53  ;;  %v4842_v53 = vld [vmem:[#allocation8 + $0x38] ss:$20 sps:$4 sm:$0xff]  }
 0x1dc   : > { %1822 = vmatpush2.bf16.msra.mxu1 %v4809_v23  ;;  %4227 = vmatprep.subr.bf16.mxu0 %v4813_v24 }
 0x1dd   : > { %1823 = vmatprep.subr.bf16.mxu1 %v4816_v25 }
 0x1df   : > { %4228 = vmatpush3.bf16.msra.mxu0 %v4817_v26 }
 0x1e0   : > { %1824 = vmatpush2.bf16.msra.mxu1 %v4814_v27  ;;  %4229 = vmatprep.subr.bf16.mxu0 %v4818_v28 }
 0x1e1   : > { %1825 = vmatprep.subr.bf16.mxu1 %v4821_v29 }
 0x1e3   : > { %4230 = vmatpush3.bf16.msra.mxu0 %v4822_v33 }
 0x1e4   : > { %1826 = vmatpush2.bf16.msra.mxu1 %v4819_v36  ;;  %4231 = vmatprep.subr.bf16.mxu0 %v4823_v37 }
 0x1e5   : > { %1827 = vmatprep.subr.bf16.mxu1 %v4826_v38  ;;  %v1969_v38 = vld [vmem:[#allocation13] sm:$0x1f] }
 0x1e7   : > { %4232 = vmatpush3.bf16.msra.mxu0 %v4827_v39 }
 0x1e8   : > { %1828 = vmatpush2.bf16.msra.mxu1 %v4824_v40  ;;  %4233 = vmatprep.subr.bf16.mxu0 %v4828_v41  ;;  %v1974_v41 = vrot.slane %v1969_v38, %v5673_v31 }
 0x1e9   : > { %1829 = vmatprep.subr.bf16.mxu1 %v4831_v42 }
 0x1eb   : > { %4234 = vmatpush3.bf16.msra.mxu0 %v4832_v43  ;;  %v1086_v43 = vsub.s32 3, %v5670_v30 }
 0x1ec   : > { %1830 = vmatpush2.bf16.msra.mxu1 %v4829_v44  ;;  %4235 = vmatprep.subr.bf16.mxu0 %v4833_v45  ;;  %v1978_v44 = vrot.slane %v1969_v38, %v5679_v34 }
 0x1ed   : > { %1831 = vmatprep.subr.bf16.mxu1 %v4836_v46 }
 0x1ef   : > { %4236 = vmatpush3.bf16.msra.mxu0 %v4837_v47 }
 0x1f0   : > { %1832 = vmatpush2.bf16.msra.mxu1 %v4834_v48  ;;  %4237 = vmatprep.subr.bf16.mxu0 %v4838_v50  ;;  %v2271_v48 = vld [vmem:[#allocation13 + $0x5] sm:$0x1f] }
 0x1f1   : > { %1833 = vmatprep.subr.bf16.mxu1 %v4841_v51 }
 0x1f3   : > { %4238 = vmatpush3.bf16.msra.mxu0 %v4842_v53 }
 0x1f4   : > { %1834 = vmatpush2.bf16.msra.mxu1 %v4839_v54  ;;  %4239 = vmatprep.subr.bf16.mxu0 %v4843_v55 }
 0x1f5   : > { %4407 = vmatprep.subr.bf16.mxu1 %v5287_v35 }
 0x1f7   : > { %1836 = vmatmul.mubr.bf16.vlgmr.msra.gmra.mxu1 %v5686_v52  ;;  %4240 = vmatpush3.bf16.msra.mxu0 %v4844_v57  ;;  %v2284_v57 = vrot.slane %v2271_v48, %v5676_v32 }
 0x1f8   : > { %4408 = vmatpush3.bf16.msra.mxu1 %v4845_v58  ;;  %3997 = vmatprep.subr.msk.mxu0 %vm2005_vm3, %v1999_v59 }
 0x1f9   : > { %4409 = vmatprep.subr.bf16.mxu1 %v5287_v35  ;;  %4423 = vmatprep.mubr.msk.bf16.mxu1 %vm5288_vm1, %v5287_v35 }
 0x1fa   : > { %1918 = vmatmul.mubr.bf16.vlgmr.msra.gmra.mxu0 %v5686_v52  ;;  %v4850_v52 = vld [vmem:[#allocation8 + $0x308] ss:$20 sps:$4 sm:$0xff]  }
 0x1fb   : > { %3998 = vmatpush1.msk.msra.mxu0 %vm2005_vm3, %v1966_v56  ;;  %2080 = vmatprep.mubr.f32.mxu0 %v5287_v35 }
 0x1fc   : > { %4410 = vmatpush3.bf16.msra.mxu1 %v4846_v60  ;;  %4427 = vmatprep.subr.mxu0 %v5287_v35 }
 0x1fd   : > { %4411 = vmatprep.subr.bf16.mxu1 %v5287_v35 }
 0x200   : > { %4412 = vmatpush3.bf16.msra.mxu1 %v4847_v61 }
 0x201   : > { %4413 = vmatprep.subr.bf16.mxu1 %v5287_v35 }
 0x202   : > { %3999 = vmatmul.mubr.msk.f32.vlgmr.msra.gmra.mxu0 %vm2001_vm2, %v1965_v63 }
 0x203   : > { %4428 = vmatpush3.msk.msra.mxu0 %vm2005_vm3, %v1968_v1  ;;  %4429 = vmatprep.mubr.msk.f32.mxu0 %vm5288_vm1, %v5287_v35 }
 0x204   : > { %4414 = vmatpush3.bf16.msra.mxu1 %v4849_v0  ;;  %4012 = vmatprep.subr.msk.mxu0 %vm2005_vm3, %v2302_v2 }
 0x205   : > { %4415 = vmatprep.subr.bf16.mxu1 %v5287_v35 }
 0x206   : > { %4430 = vmatmul.mubr.msk.f32.vlgmr.msra.gmra.mxu0 %vm2001_vm2, %v1965_v63 }
 0x207   : > { %4013 = vmatpush1.msk.msra.mxu0 %vm2005_vm3, %v2268_v62  ;;  %2451 = vmatprep.mubr.f32.mxu0 %v5287_v35  ;;  %v2288_v62 = vrot.slane %v2271_v48, %v1086_v43 }
 0x208   : > { %4416 = vmatpush3.bf16.msra.mxu1 %v4850_v52 }
 0x209   : > { %4417 = vmatprep.subr.bf16.mxu1 %v5287_v35 }
 0x20a   : > { %4014 = vmatmul.mubr.msk.f32.vlgmr.msra.gmra.mxu0 %vm2001_vm2, %v1965_v63 }
 0x20c   : > { %4418 = vmatpush3.bf16.msra.mxu1 %v4852_v3 }
 0x20d   : > { %4419 = vmatprep.subr.bf16.mxu1 %v5287_v35 }
 0x210   : > { %4420 = vmatpush3.bf16.msra.mxu1 %v4853_v4  ;;  %v1090_v4 = vsub.s32 4, %v5670_v30  ;;  %v1986_v30 = vrot.slane %v1969_v38, %v1086_v43 }
 0x211   : > { %4421 = vmatprep.subr.bf16.mxu1 %v5287_v35 }
 0x214   : > { %4422 = vmatpush3.bf16.msra.mxu1 %v4854_v6 }
 0x215   : > { %4000 = vmatprep.subr.msk.mxu1 %vm2005_vm3, %v2000_v7 }
 0x217   : > { %4424 = vmatmul.mubr.bf16.vlgmr.msra.gmra.mxu1 %v5684_v49  ;;  %v5738_v49 = vld [vmem:[#allocation10] sm:$0x1f] }
 0x218   : > { %4001 = vmatpush1.msk.msra.mxu1 %vm2005_vm3, %v1967_v5  ;;  %2151 = vmatprep.mubr.f32.mxu1 %v5287_v35  ;;  %v1075_v12 = vrot.slane %v5738_v49, %v5673_v31  ;;  %v1079_v14 = vrot.slane %v5738_v49, %v5679_v34  ;;  %v1083_v50 = vrot.slane %v5738_v49, %v5676_v32 }
 0x219   : > { %4009 = vmatprep.subr.msk.mxu1 %vm2005_vm3, %v2301_v9  ;;  %v1087_v51 = vrot.slane %v5738_v49, %v1086_v43  ;;  %v1990_v9 = vrot.slane %v1969_v38, %v1090_v4 }
 0x21f   : > { %4002 = vmatmul.mubr.msk.f32.vlgmr.msra.gmra.mxu1 %vm2001_vm2, %v1965_v63 }
 0x220   : > { %4010 = vmatpush1.msk.msra.mxu1 %vm2005_vm3, %v2267_v8  ;;  %2380 = vmatprep.mubr.f32.mxu1 %v5287_v35 }
 0x221   : > { %4432 = vmatprep.subr.mxu1 %v5287_v35 }
 0x223   : > { %4011 = vmatmul.mubr.msk.f32.vlgmr.msra.gmra.mxu1 %vm2001_vm2, %v1965_v63 }
 0x224   : > { %4433 = vmatpush3.msk.msra.mxu1 %vm2005_vm3, %v2269_v10  ;;  %4434 = vmatprep.mubr.msk.f32.mxu1 %vm5288_vm1, %v5287_v35  ;;  %v1091_v10 = vrot.slane %v5738_v49, %v1090_v4 }
 0x227   : > { %4435 = vmatmul.mubr.msk.f32.vlgmr.msra.gmra.mxu1 %vm2001_vm2, %v1965_v63 }
 0x277   : > { %v1796_v11 = vpop.f32.mrf.mxu1 }
 0x279   : > { %v1798_v13 = vpop.f32.mrf.mxu1 }
 0x27a   : > { %v1755_v15 = vpop.f32.mrf.mxu0 }
 0x27b   : > { %v1756_v16 = vadd.f32 %v1755_v15, %v1075_v12  ;;  %v1800_v17 = vpop.f32.mrf.mxu1 }
 0x27c   : > { %v1757_v18 = vpop.f32.mrf.mxu0 }
 0x27d   : > { %v5744_v19 = vadd.f32 %v1796_v11, %v1756_v16  ;;  %v1758_v20 = vadd.f32 %v1757_v18, %v1079_v14  ;;  %v1801_v35 = vpop.f32.mrf.mxu1 }
 0x27e   : > { %v1759_v21 = vpop.f32.mrf.mxu0 }
 0x27f   : > { %v5746_v22 = vadd.f32 %v1798_v13, %v1758_v20  ;;  %v1982_v20 = vrot.slane %v1969_v38, %v5676_v32 }
 0x280   : > { %v1760_v23 = vpop.f32.mrf.mxu0 }
 0x29a   : > { %v1878_v24 = vpop.f32.mrf.mxu0 }
 0x29c   : > { %v1880_v25 = vpop.f32.mrf.mxu0 }
 0x29e   : > { %v1882_v26 = vpop.f32.mrf.mxu0 }
 0x29f   : > { %v2280_v26 = vrot.slane %v2271_v48, %v5679_v34 }
 0x2a0   : > { %v1883_v27 = vpop.f32.mrf.mxu0 }
 0x2b7   : > { %v1837_v28 = vpop.f32.mrf.mxu1 }
 0x2b8   : > { %v1838_v59 = vadd.f32 %v1837_v28, %v1083_v50 }
 0x2b9   : > { %v1839_v29 = vpop.f32.mrf.mxu1 }
 0x2ba   : > { %v4241_v33 = vpop.f32.mrf.mxu0  ;;  %v1840_v60 = vadd.f32 %v1839_v29, %v1087_v51  ;;  %v1879_v2 = vadd.f32 %v1878_v24, %v1838_v59  ;;  %v2276_v24 = vrot.slane %v2271_v48, %v5673_v31 }
 0x2bb   : > { %v1841_v36 = vpop.f32.mrf.mxu1 }
 0x2bc   : > { %v4242_v37 = vpop.f32.mrf.mxu0  ;;  %v1881_v52 = vadd.f32 %v1880_v25, %v1840_v60  ;;  %v2292_v36 = vrot.slane %v2271_v48, %v1090_v4 }
 0x2bd   : > { %v1842_v39 = vpop.f32.mrf.mxu1  ;;  %v4243_v8 = vadd.f32 %v4242_v37, %v4241_v33 }
 0x2be   : > { %v4244_v40 = vpop.f32.mrf.mxu0 }
 0x2bf   : > { %v1920_v12 = vadd.f32 %v4243_v8, %v1091_v10 }
 0x2c0   : > { %v4245_v42 = vpop.f32.mrf.mxu0 }
 0x2c2   : > { %v2082_v45 = vpop.f32.mrf.mxu0 }
 0x2c3   : > { %v2083_v46 = vadd.f32 %v2082_v45, %v1974_v41 }
 0x2c4   : > { %v2084_v47 = vpop.f32.mrf.mxu0 }
 0x2c5   : > { %v2085_v53 = vadd.f32 %v2084_v47, %v1978_v44  ;;  %v2228_v55 = vadd.f32 %v2083_v46, %v5744_v19 }
 0x2c6   : > { %v2224_v54 = vpop.f32.mrf.mxu0 }
 0x2c7   : > { %v2229_v56 = vadd.f32 %v2085_v53, %v5746_v22  ;;  %v2225_v11 = vadd.f32 %v2224_v54, %v1990_v9 }
 0x2c8   : > { %v4431_v58 = vpop.f32.mrf.mxu0 }
 0x2c9   : > { %v4216_v61 = vpack.c.bf16 %v2229_v56, %v2228_v55 }
 0x2ca   : > { %v2453_v63 = vpop.f32.mrf.mxu0 }
 0x2cb   : > { %2254 = vst [vmem:[#allocation2] sm:$0xff] %v4216_v61  ;;  %v2454_v0 = vadd.f32 %v2453_v63, %v2284_v57 }
 0x2cc   : > { %v2455_v1 = vpop.f32.mrf.mxu0 }
 0x2cd   : > { %v2456_v3 = vadd.f32 %v2455_v1, %v2288_v62  ;;  %v2530_v5 = vadd.f32 %v2454_v0, %v1879_v2 }
 0x2cf   : > { %v2531_v6 = vadd.f32 %v2456_v3, %v1881_v52 }
 0x2d1   : > { %v4220_v7 = vpack.c.bf16 %v2531_v6, %v2530_v5 }
 0x2d3   : > { %2556 = vst [vmem:[#allocation2 + $0x1c] sm:$0xff] %v4220_v7 }
 0x2d7   : > { %v1959_v13 = vpop.f32.mrf.mxu1 }
 0x2d8   : > { %v1960_v14 = vadd.f32 %v1959_v13, %v1920_v12 }
 0x2d9   : > { %v4425_v15 = vpop.f32.mrf.mxu1 }
 0x2da   : > { %v2232_v16 = vadd.f32 %v2225_v11, %v1960_v14 }
 0x2db   : > { %v1962_v17 = vpop.f32.mrf.mxu1 }
 0x2dc   : > { %v4218_v18 = vpack.c.bf16 %v2232_v16, %v2232_v16 }
 0x2dd   : > { %v4426_v35 = vpop.f32.mrf.mxu1 }
 0x2de   : > { %2256 = vst [vmem:[#allocation2 + $0x10] sm:$0xf] %v4218_v18 }
 0x2df   : > { %v2153_v21 = vpop.f32.mrf.mxu1 }
 0x2e0   : > { %v2154_v23 = vadd.f32 %v2153_v21, %v1982_v20 }
 0x2e1   : > { %v2155_v25 = vpop.f32.mrf.mxu1 }
 0x2e2   : > { %v2156_v49 = vadd.f32 %v2155_v25, %v1986_v30  ;;  %v2230_v28 = vadd.f32 %v2154_v23, %v1879_v2 }
 0x2e3   : > { %v2382_v27 = vpop.f32.mrf.mxu1 }
 0x2e4   : > { %v2231_v29 = vadd.f32 %v2156_v49, %v1881_v52  ;;  %v2383_v33 = vadd.f32 %v2382_v27, %v2276_v24 }
 0x2e5   : > { %v2384_v37 = vpop.f32.mrf.mxu1 }
 0x2e6   : > { %v4217_v39 = vpack.c.bf16 %v2231_v29, %v2230_v28  ;;  %v2385_v40 = vadd.f32 %v2384_v37, %v2280_v26  ;;  %v2528_v38 = vadd.f32 %v2383_v33, %v5744_v19 }
 0x2e7   : > { %v2524_v32 = vpop.f32.mrf.mxu1 }
 0x2e8   : > { %2255 = vst [vmem:[#allocation2 + $0x8] sm:$0xff] %v4217_v39  ;;  %v2529_v41 = vadd.f32 %v2385_v40, %v5746_v22  ;;  %v2525_v42 = vadd.f32 %v2524_v32, %v2292_v36 }
 0x2e9   : > { %v4436_v31 = vpop.f32.mrf.mxu1 }
 0x2ea   : > { %v4219_v43 = vpack.c.bf16 %v2529_v41, %v2528_v38  ;;  %v2532_v44 = vadd.f32 %v2525_v42, %v1960_v14 }
 0x2ec   : > { %2555 = vst [vmem:[#allocation2 + $0x14] sm:$0xff] %v4219_v43  ;;  %v4221_v34 = vpack.c.bf16 %v2532_v44, %v2532_v44 }
 0x2ee   : > { %2557 = vst [vmem:[#allocation2 + $0x24] sm:$0xf] %v4221_v34 }
 0x2ef PF: > { %v4857_v19 = vld [vmem:[%s5641_s28 + $0x78] sm:$0xff]   ;;  %v4861_v47 = vld [vmem:[%s5641_s28 + $0x70] sm:$0xff]   ;;  %v4865_v53 = vld [vmem:[%s5641_s28 + $0x68] sm:$0xff]   ;;  %v5290_v15 = vmov 0.0   ;;  %vm5291_vm4 = vmmov 0   ;;  %s6011_s0 = sld [smem:[#allocation31_spill]] }
 0x2f0   : > { %v4858_v45 = vld [vmem:[%s5641_s28 + $0x38] sm:$0xff]   ;;  %4260 = vmatprep.subr.bf16.mxu0 %v4857_v19  ;;  %v4862_v48 = vld [vmem:[%s5641_s28 + $0x30] sm:$0xff]   ;;  %v4866_v54 = vld [vmem:[%s5641_s28 + $0x28] sm:$0xff]   ;;  %vm3125_vm5 = vcmask 31744  }
 0x2f1   : > { %v4859_v22 = vld [vmem:[%s5641_s28 + $0xf8] sm:$0xff]   ;;  %4261 = vmatpush3.bf16.msra.mxu0 %v4858_v45  ;;  %v4863_v50 = vld [vmem:[%s5641_s28 + $0xf0] sm:$0xff]   ;;  %v4867_v55 = vld [vmem:[%s5641_s28 + $0xe8] sm:$0xff]  }
 0x2f2   : > { %v4860_v46 = vld [vmem:[%s5641_s28 + $0xb8] sm:$0xff]   ;;  %4282 = vmatprep.subr.bf16.mxu1 %v4859_v22  ;;  %4262 = vmatprep.subr.bf16.mxu0 %v4861_v47  ;;  %v4864_v51 = vld [vmem:[%s5641_s28 + $0xb0] sm:$0xff]   ;;  %v4868_v56 = vld [vmem:[%s5641_s28 + $0xa8] sm:$0xff]  }
 0x2f3   : > { %4283 = vmatpush3.bf16.msra.mxu1 %v4860_v46  ;;  %v4869_v57 = vld [vmem:[%s5641_s28 + $0x60] sm:$0xff]   ;;  %v4873_v61 = vld [vmem:[%s5641_s28 + $0x58] sm:$0xff]   ;;  %v4877_v1 = vld [vmem:[%s5641_s28 + $0x50] sm:$0xff]  }
 0x2f4   : > { %4284 = vmatprep.subr.bf16.mxu1 %v4863_v50  ;;  %v4870_v58 = vld [vmem:[%s5641_s28 + $0x20] sm:$0xff]   ;;  %v4874_v62 = vld [vmem:[%s5641_s28 + $0x18] sm:$0xff]   ;;  %v4878_v2 = vld [vmem:[%s5641_s28 + $0x10] sm:$0xff]  }
 0x2f5   : > { %4263 = vmatpush3.bf16.msra.mxu0 %v4862_v48  ;;  %v4871_v59 = vld [vmem:[%s5641_s28 + $0xe0] sm:$0xff]   ;;  %v4875_v63 = vld [vmem:[%s5641_s28 + $0xd8] sm:$0xff]   ;;  %v4879_v52 = vld [vmem:[%s5641_s28 + $0xd0] sm:$0xff]  }
 0x2f6   : > { %4264 = vmatprep.subr.bf16.mxu0 %v4865_v53  ;;  %v4872_v60 = vld [vmem:[%s5641_s28 + $0xa0] sm:$0xff]   ;;  %v4876_v0 = vld [vmem:[%s5641_s28 + $0x98] sm:$0xff]   ;;  %v4880_v3 = vld [vmem:[%s5641_s28 + $0x90] sm:$0xff]  }
 0x2f7   : > { %4285 = vmatpush3.bf16.msra.mxu1 %v4864_v51  ;;  %v4881_v4 = vld [vmem:[%s5641_s28 + $0x48] sm:$0xff]   ;;  %v4885_v8 = vld [vmem:[%s5641_s28 + $0x40] sm:$0xff]   ;;  %v4893_v20 = vld [vmem:[%s5641_s28 + $0x138] sm:$0xff]  }
 0x2f8   : > { %4286 = vmatprep.subr.bf16.mxu1 %v4867_v55  ;;  %v4882_v5 = vld [vmem:[%s5641_s28 + $0x8] sm:$0xff]   ;;  %v4886_v9 = vld [vmem:[%s5641_s28] sm:$0xff]   ;;  %v4894_v35 = vld [vmem:[%s5641_s28 + $0x130] sm:$0xff]  }
 0x2f9   : > { %4265 = vmatpush3.bf16.msra.mxu0 %v4866_v54  ;;  %v4883_v6 = vld [vmem:[%s5641_s28 + $0xc8] sm:$0xff]   ;;  %v4887_v10 = vld [vmem:[%s5641_s28 + $0xc0] sm:$0xff]   ;;  %v4897_v23 = vld [vmem:[%s5641_s28 + $0x118] sm:$0xff]  }
 0x2fa   : > { %4266 = vmatprep.subr.bf16.mxu0 %v4869_v57  ;;  %v4884_v7 = vld [vmem:[%s5641_s28 + $0x88] sm:$0xff]   ;;  %v4890_v14 = vld [vmem:[%s5641_s28 + $0x80] sm:$0xff]   ;;  %v4898_v24 = vld [vmem:[%s5641_s28 + $0x110] sm:$0xff]  }
 0x2fb   : > { %4287 = vmatpush3.bf16.msra.mxu1 %v4868_v56  ;;  %v2568_v11 = vld [vmem:[#allocation2] sm:$0xff]  ;;  %v2569_v16 = vld [vmem:[#allocation2 + $0x8] sm:$0xff]  ;;  %v4901_v26 = vld [vmem:[#allocation2 + $0x10] ss:$0 sps:$4 sm:$0xff]  }
 0x2fc   : > { %4288 = vmatprep.subr.bf16.mxu1 %v4871_v59  ;;  %v4023_v12 = vcombine.low %v2568_v11, %v2568_v11  ;;  %v4024_v13 = vcombine.high %v2568_v11, %v2568_v11  ;;  %v4025_v17 = vcombine.low %v2569_v16, %v2569_v16  ;;  %v4026_v18 = vcombine.high %v2569_v16, %v2569_v16  ;;  %v4895_v30 = vld [vmem:[%s5641_s28 + $0x128] sm:$0xff]   ;;  %v4896_v21 = vld [vmem:[%s5641_s28 + $0x120] sm:$0xff]   ;;  %v4902_v27 = vld [vmem:[%s5641_s28 + $0x1b8] sm:$0xff]  }
 0x2fd   : > { %4267 = vmatpush3.bf16.msra.mxu0 %v4870_v58  ;;  %v4899_v25 = vld [vmem:[%s5641_s28 + $0x108] sm:$0xff]   ;;  %v4900_v49 = vld [vmem:[%s5641_s28 + $0x100] sm:$0xff]   ;;  %v4903_v28 = vld [vmem:[%s5641_s28 + $0x178] sm:$0xff]  }
 0x2fe   : > { %4268 = vmatprep.subr.bf16.mxu0 %v4873_v61  ;;  %2948 = vmatprep.mubr.bf16.mxu0 %v4024_v13  ;;  %v3053_v29 = vld [vmem:[%s5649_s19 + $0x78] sm:$0xff]  ;;  %v3052_v33 = vld [vmem:[%s5649_s19 + $0x70] sm:$0xff]  ;;  %v3051_v37 = vld [vmem:[%s5649_s19 + $0x68] sm:$0xff] }
 0x2ff   : > { %4289 = vmatpush3.bf16.msra.mxu1 %v4872_v60  ;;  %2988 = vmatprep.mubr.bf16.mxu1 %v4026_v18  ;;  %v4904_v36 = vld [vmem:[%s5641_s28 + $0x1b0] sm:$0xff]   ;;  %v4906_v40 = vld [vmem:[%s5641_s28 + $0x1a8] sm:$0xff]   ;;  %v3049_v41 = vld [vmem:[%s5649_s19 + $0x58] sm:$0xff] }
 0x300   : > { %4290 = vmatprep.subr.bf16.mxu1 %v4875_v63  ;;  %v4905_v39 = vld [vmem:[%s5641_s28 + $0x170] sm:$0xff]   ;;  %v3050_v32 = vld [vmem:[%s5649_s19 + $0x60] sm:$0xff]  ;;  %v4910_v34 = vld [vmem:[%s5641_s28 + $0x198] sm:$0xff]  }
 0x301   : > { %4269 = vmatpush3.bf16.msra.mxu0 %v4874_v62  ;;  %v4907_v38 = vld [vmem:[%s5641_s28 + $0x168] sm:$0xff]   ;;  %v4908_v42 = vld [vmem:[%s5641_s28 + $0x1a0] sm:$0xff]   ;;  %v3048_v31 = vld [vmem:[%s5649_s19 + $0x50] sm:$0xff] }
 0x302   : > { %4270 = vmatprep.subr.bf16.mxu0 %v4877_v1  ;;  %v4909_v43 = vld [vmem:[%s5641_s28 + $0x160] sm:$0xff]   ;;  %v3047_v44 = vld [vmem:[%s5649_s19 + $0x48] sm:$0xff]  ;;  %v4911_v45 = vld [vmem:[%s5641_s28 + $0x158] sm:$0xff]  }
 0x303   : > { %4291 = vmatpush3.bf16.msra.mxu1 %v4876_v0  ;;  %v3046_v19 = vld [vmem:[%s5649_s19 + $0x40] sm:$0xff]  ;;  %v3045_v22 = vld [vmem:[%s5649_s19 + $0x38] sm:$0xff]  ;;  %v4912_v46 = vld [vmem:[%s5641_s28 + $0x190] sm:$0xff]  }
 0x304   : > { %4292 = vmatprep.subr.bf16.mxu1 %v4879_v52  ;;  %v3044_v47 = vld [vmem:[%s5649_s19 + $0x30] sm:$0xff]  ;;  %v3043_v50 = vld [vmem:[%s5649_s19 + $0x28] sm:$0xff]  ;;  %v3042_v53 = vld [vmem:[%s5649_s19 + $0x20] sm:$0xff] }
 0x305   : > { %4271 = vmatpush3.bf16.msra.mxu0 %v4878_v2  ;;  %v4913_v48 = vld [vmem:[%s5641_s28 + $0x150] sm:$0xff]   ;;  %v4914_v51 = vld [vmem:[%s5641_s28 + $0x188] sm:$0xff]   ;;  %v3041_v55 = vld [vmem:[%s5649_s19 + $0x18] sm:$0xff] }
 0x306   : > { %4272 = vmatprep.subr.bf16.mxu0 %v4881_v4  ;;  %v4915_v54 = vld [vmem:[%s5641_s28 + $0x148] sm:$0xff]   ;;  %v3040_v56 = vld [vmem:[%s5649_s19 + $0x10] sm:$0xff]  ;;  %v4916_v57 = vld [vmem:[%s5641_s28 + $0x180] sm:$0xff]  }
 0x307   : > { %4293 = vmatpush3.bf16.msra.mxu1 %v4880_v3  ;;  %v4917_v58 = vld [vmem:[%s5641_s28 + $0x140] sm:$0xff]   ;;  %v3039_v59 = vld [vmem:[%s5649_s19 + $0x8] sm:$0xff]  ;;  %v3128_v60 = vld [vmem:[#allocation2 + $0x14] sm:$0xff] }
 0x308   : > { %4294 = vmatprep.subr.bf16.mxu1 %v4883_v6  ;;  %v3038_v61 = vld [vmem:[%s5649_s19] sm:$0xff]  ;;  %v4151_v62 = vcombine.high %v3128_v60, %v3128_v60  ;;  %v4920_v63 = vld [vmem:[%s5641_s28 + $0x238] sm:$0xff]   ;;  %v4150_v0 = vcombine.low %v3128_v60, %v3128_v60  ;;  %v4925_v2 = vld [vmem:[%s5641_s28 + $0x270] sm:$0xff]  }
 0x309   : > { %4273 = vmatpush3.bf16.msra.mxu0 %v4882_v5  ;;  %v4922_v1 = vld [vmem:[%s5641_s28 + $0x278] sm:$0xff]   ;;  %v4928_v52 = vld [vmem:[%s5641_s28 + $0x268] sm:$0xff]   ;;  %v4931_v3 = vld [vmem:[%s5641_s28 + $0x260] sm:$0xff]  }
 0x30a   : > { %4274 = vmatprep.subr.bf16.mxu0 %v4885_v8  ;;  %v4934_v4 = vld [vmem:[%s5641_s28 + $0x258] sm:$0xff]   ;;  %v4937_v5 = vld [vmem:[%s5641_s28 + $0x250] sm:$0xff]   ;;  %v4940_v6 = vld [vmem:[%s5641_s28 + $0x248] sm:$0xff]  }
 0x30b   : > { %4295 = vmatpush3.bf16.msra.mxu1 %v4884_v7  ;;  %v4943_v7 = vld [vmem:[%s5641_s28 + $0x240] sm:$0xff]   ;;  %v4946_v8 = vld [vmem:[#allocation2 + $0x24] ss:$0 sps:$4 sm:$0xff]  }
 0x30c   : > { %4296 = vmatprep.subr.bf16.mxu1 %v4887_v10  ;;  %v4204_v60 = vld [vmem:[%s5649_s19 + $0xc0] sm:$0xff] }
 0x30d   : > { %4275 = vmatpush3.bf16.msra.mxu0 %v4886_v9 }
 0x30e   : > { %4437 = vmatprep.subr.bf16.mxu0 %v5290_v15 }
 0x30f   : > { %4297 = vmatpush3.bf16.msra.mxu1 %v4890_v14 }
 0x310   : > { %2949 = vmatmul.mubr.bf16.vlgmr.msra.gmra.mxu0 %v4023_v12  ;;  %4457 = vmatprep.subr.mxu1 %v5290_v15 }
 0x311   : > { %4438 = vmatpush3.bf16.msra.mxu0 %v4893_v20  ;;  %4453 = vmatprep.mubr.msk.bf16.mxu0 %vm5291_vm4, %v5290_v15  ;;  %v4022_v20 = vld [vmem:[%s5647_s1] ss:$0 sm:$0xff] }
 0x312   : > { %2989 = vmatmul.mubr.bf16.vlgmr.msra.gmra.mxu1 %v4025_v17  ;;  %4439 = vmatprep.subr.bf16.mxu0 %v5290_v15 }
 0x313   : > { %4489 = vmatprep.mubr.msk.f32.mxu1 %vm5291_vm4, %v5290_v15  ;;  %4458 = vmatpush3.msra.mxu1 %v3053_v29  ;;  %v4923_v29 = vld [vmem:[%s5641_s28 + $0x230] sm:$0xff]  }
 0x314   : > { %4459 = vmatprep.subr.mxu1 %v5290_v15 }
 0x315   : > { %4440 = vmatpush3.bf16.msra.mxu0 %v4894_v35  ;;  %4460 = vmatpush3.msra.mxu1 %v3052_v33 }
 0x316   : > { %4441 = vmatprep.subr.bf16.mxu0 %v5290_v15  ;;  %4461 = vmatprep.subr.mxu1 %v5290_v15 }
 0x317   : > { %4462 = vmatpush3.msra.mxu1 %v3051_v37  ;;  %v4924_v37 = vld [vmem:[%s5641_s28 + $0x1f0] sm:$0xff]  }
 0x318   : > { %4463 = vmatprep.subr.mxu1 %v5290_v15 }
 0x319   : > { %4442 = vmatpush3.bf16.msra.mxu0 %v4895_v30  ;;  %4464 = vmatpush3.msra.mxu1 %v3050_v32  ;;  %v4929_v32 = vld [vmem:[%s5641_s28 + $0x220] sm:$0xff]  }
 0x31a   : > { %4443 = vmatprep.subr.bf16.mxu0 %v5290_v15  ;;  %4465 = vmatprep.subr.mxu1 %v5290_v15 }
 0x31b   : > { %4466 = vmatpush3.msra.mxu1 %v3049_v41  ;;  %v4932_v41 = vld [vmem:[%s5641_s28 + $0x218] sm:$0xff]  }
 0x31c   : > { %4467 = vmatprep.subr.mxu1 %v5290_v15 }
 0x31d   : > { %4444 = vmatpush3.bf16.msra.mxu0 %v4896_v21  ;;  %4468 = vmatpush3.msra.mxu1 %v3048_v31  ;;  %v4935_v31 = vld [vmem:[%s5641_s28 + $0x210] sm:$0xff]  }
 0x31e   : > { %4445 = vmatprep.subr.bf16.mxu0 %v5290_v15  ;;  %4469 = vmatprep.subr.mxu1 %v5290_v15 }
 0x31f   : > { %4470 = vmatpush3.msra.mxu1 %v3047_v44  ;;  %v4938_v44 = vld [vmem:[%s5641_s28 + $0x208] sm:$0xff]  }
 0x320   : > { %4471 = vmatprep.subr.mxu1 %v5290_v15 }
 0x321   : > { %4446 = vmatpush3.bf16.msra.mxu0 %v4897_v23  ;;  %4472 = vmatpush3.msra.mxu1 %v3046_v19  ;;  %v3129_v23 = vld [vmem:[#allocation2 + $0x1c] sm:$0xff] }
 0x322   : > { %4447 = vmatprep.subr.bf16.mxu0 %v5290_v15  ;;  %4473 = vmatprep.subr.mxu1 %v5290_v15  ;;  %v4941_v19 = vld [vmem:[%s5641_s28 + $0x200] sm:$0xff]  }
 0x323   : > { %4474 = vmatpush3.msra.mxu1 %v3045_v22  ;;  %v4152_v22 = vcombine.low %v3129_v23, %v3129_v23 }
 0x324   : > { %4475 = vmatprep.subr.mxu1 %v5290_v15 }
 0x325   : > { %4448 = vmatpush3.bf16.msra.mxu0 %v4898_v24  ;;  %4476 = vmatpush3.msra.mxu1 %v3044_v47 }
 0x326   : > { %4449 = vmatprep.subr.bf16.mxu0 %v5290_v15  ;;  %4477 = vmatprep.subr.mxu1 %v5290_v15 }
 0x327   : > { %4478 = vmatpush3.msra.mxu1 %v3043_v50  ;;  %v4210_v50 = vld [vmem:[%s5649_s19 + $0xf0] sm:$0xff] }
 0x328   : > { %4479 = vmatprep.subr.mxu1 %v5290_v15 }
 0x329   : > { %4450 = vmatpush3.bf16.msra.mxu0 %v4899_v25  ;;  %4480 = vmatpush3.msra.mxu1 %v3042_v53 }
 0x32a   : > { %4451 = vmatprep.subr.bf16.mxu0 %v5290_v15  ;;  %4481 = vmatprep.subr.mxu1 %v5290_v15 }
 0x32b   : > { %4482 = vmatpush3.msra.mxu1 %v3041_v55 }
 0x32c   : > { %4483 = vmatprep.subr.mxu1 %v5290_v15 }
 0x32d   : > { %4452 = vmatpush3.bf16.msra.mxu0 %v4900_v49  ;;  %4484 = vmatpush3.msra.mxu1 %v3040_v56  ;;  %v4208_v56 = vld [vmem:[%s5649_s19 + $0xe0] sm:$0xff] }
 0x32e   : > { %4330 = vmatprep.subr.bf16.mxu0 %v4902_v27  ;;  %4485 = vmatprep.subr.mxu1 %v5290_v15  ;;  %v4153_v27 = vcombine.high %v3129_v23, %v3129_v23 }
 0x32f   : > { %4486 = vmatpush3.msra.mxu1 %v3039_v59  ;;  %v4205_v59 = vld [vmem:[%s5649_s19 + $0xc8] sm:$0xff] }
 0x330   : > { %4454 = vmatmul.mubr.bf16.vlgmr.msra.gmra.mxu0 %v4901_v26  ;;  %4487 = vmatprep.subr.mxu1 %v5290_v15  ;;  %v4921_v26 = vld [vmem:[%s5641_s28 + $0x1f8] sm:$0xff]  }
 0x331   : > { %4331 = vmatpush3.bf16.msra.mxu0 %v4903_v28  ;;  %4488 = vmatpush3.msra.mxu1 %v3038_v61  ;;  %v4203_v61 = vld [vmem:[%s5649_s19 + $0xb8] sm:$0xff] }
 0x332   : > { %4332 = vmatprep.subr.bf16.mxu0 %v4904_v36  ;;  %3510 = vmatprep.mubr.bf16.mxu0 %v4151_v62  ;;  %v4202_v62 = vld [vmem:[%s5649_s19 + $0xb0] sm:$0xff] }
 0x333   : > { %4352 = vmatprep.subr.bf16.mxu1 %v4920_v63  ;;  %v4201_v63 = vld [vmem:[%s5649_s19 + $0xa8] sm:$0xff] }
 0x335   : > { %4333 = vmatpush3.bf16.msra.mxu0 %v4905_v39  ;;  %v4926_v39 = vld [vmem:[%s5641_s28 + $0x228] sm:$0xff]  }
 0x336   : > { %4334 = vmatprep.subr.bf16.mxu0 %v4906_v40  ;;  %v4927_v40 = vld [vmem:[%s5641_s28 + $0x1e8] sm:$0xff]  }
 0x339   : > { %4335 = vmatpush3.bf16.msra.mxu0 %v4907_v38  ;;  %v4930_v38 = vld [vmem:[%s5641_s28 + $0x1e0] sm:$0xff]  }
 0x33a   : > { %4336 = vmatprep.subr.bf16.mxu0 %v4908_v42  ;;  %v4933_v42 = vld [vmem:[%s5641_s28 + $0x1d8] sm:$0xff]  }
 0x33d   : > { %4337 = vmatpush3.bf16.msra.mxu0 %v4909_v43  ;;  %v4936_v43 = vld [vmem:[%s5641_s28 + $0x1d0] sm:$0xff]  }
 0x33e   : > { %4338 = vmatprep.subr.bf16.mxu0 %v4910_v34  ;;  %v4939_v34 = vld [vmem:[%s5641_s28 + $0x1c8] sm:$0xff]  }
 0x341   : > { %4339 = vmatpush3.bf16.msra.mxu0 %v4911_v45  ;;  %v4942_v45 = vld [vmem:[%s5641_s28 + $0x1c0] sm:$0xff]  }
 0x342   : > { %4340 = vmatprep.subr.bf16.mxu0 %v4912_v46 }
 0x345   : > { %4341 = vmatpush3.bf16.msra.mxu0 %v4913_v48  ;;  %v4211_v48 = vld [vmem:[%s5649_s19 + $0xf8] sm:$0xff] }
 0x346   : > { %4342 = vmatprep.subr.bf16.mxu0 %v4914_v51 }
 0x349   : > { %4343 = vmatpush3.bf16.msra.mxu0 %v4915_v54  ;;  %v4209_v54 = vld [vmem:[%s5649_s19 + $0xe8] sm:$0xff] }
 0x34a   : > { %4344 = vmatprep.subr.bf16.mxu0 %v4916_v57  ;;  %v4207_v57 = vld [vmem:[%s5649_s19 + $0xd8] sm:$0xff] }
 0x34d   : > { %4345 = vmatpush3.bf16.msra.mxu0 %v4917_v58  ;;  %v4206_v58 = vld [vmem:[%s5649_s19 + $0xd0] sm:$0xff] }
 0x34e   : > { %4492 = vmatprep.subr.bf16.mxu0 %v5290_v15 }
 0x350   : > { %3511 = vmatmul.mubr.bf16.vlgmr.msra.gmra.mxu0 %v4150_v0 }
 0x351   : > { %4493 = vmatpush3.bf16.msra.mxu0 %v4922_v1  ;;  %4508 = vmatprep.mubr.msk.bf16.mxu0 %vm5291_vm4, %v5290_v15  ;;  %v4200_v1 = vld [vmem:[%s5649_s19 + $0xa0] sm:$0xff] }
 0x352   : > { %4494 = vmatprep.subr.bf16.mxu0 %v5290_v15 }
 0x355   : > { %4495 = vmatpush3.bf16.msra.mxu0 %v4925_v2 }
 0x356   : > { %4496 = vmatprep.subr.bf16.mxu0 %v5290_v15 }
 0x359   : > { %4497 = vmatpush3.bf16.msra.mxu0 %v4928_v52  ;;  %v4199_v52 = vld [vmem:[%s5649_s19 + $0x98] sm:$0xff] }
 0x35a   : > { %4498 = vmatprep.subr.bf16.mxu0 %v5290_v15 }
 0x35d   : > { %4499 = vmatpush3.bf16.msra.mxu0 %v4931_v3 }
 0x35e   : > { %4500 = vmatprep.subr.bf16.mxu0 %v5290_v15 }
 0x361   : > { %4501 = vmatpush3.bf16.msra.mxu0 %v4934_v4  ;;  %v4198_v4 = vld [vmem:[%s5649_s19 + $0x90] sm:$0xff] }
 0x362   : > { %4502 = vmatprep.subr.bf16.mxu0 %v5290_v15 }
 0x365   : > { %4503 = vmatpush3.bf16.msra.mxu0 %v4937_v5 }
 0x366   : > { %4504 = vmatprep.subr.bf16.mxu0 %v5290_v15 }
 0x369   : > { %4505 = vmatpush3.bf16.msra.mxu0 %v4940_v6  ;;  %v4197_v6 = vld [vmem:[%s5649_s19 + $0x88] sm:$0xff] }
 0x36a   : > { %4506 = vmatprep.subr.bf16.mxu0 %v5290_v15 }
 0x36d   : > { %4507 = vmatpush3.bf16.msra.mxu0 %v4943_v7  ;;  %v4196_v7 = vld [vmem:[%s5649_s19 + $0x80] sm:$0xff] }
 0x370   : > { %4509 = vmatmul.mubr.bf16.vlgmr.msra.gmra.mxu0 %v4946_v8  ;;  %v3037_v8 = vld [vmem:[%s6011_s0] sm:$0xff] }
 0x3d0   : > { %v4276_v9 = vpop.f32.mrf.mxu0 }
 0x3d2   : > { %v4277_v10 = vpop.f32.mrf.mxu0  ;;  %v4298_v11 = vpop.f32.mrf.mxu1 }
 0x3d3   : > { %v4278_v18 = vadd.f32 %v4277_v10, %v4276_v9 }
 0x3d4   : > { %v4279_v12 = vpop.f32.mrf.mxu0  ;;  %v4299_v13 = vpop.f32.mrf.mxu1 }
 0x3d5   : > { %v2951_v35 = vadd.f32 %v4278_v18, %v4022_v20  ;;  %v4300_v30 = vadd.f32 %v4299_v13, %v4298_v11  ;;  %v4149_v12 = vld [vmem:[%s5647_s1 + $0x1] ss:$0 sm:$0xff] }
 0x3d6   : > { %v4280_v14 = vpop.f32.mrf.mxu0  ;;  %v4301_v16 = vpop.f32.mrf.mxu1 }
 0x3d7   : > { %v2991_v21 = vadd.f32 %v4300_v30, %v2951_v35 }
 0x3d8   : > { %v4302_v17 = vpop.f32.mrf.mxu1 }
 0x3f0   : > { %v3030_v24 = vpop.f32.mrf.mxu0 }
 0x3f1   : > { %v3031_v25 = vadd.f32 %v3030_v24, %v2991_v21  ;;  %v4195_v21 = vld [vmem:[%s6011_s0 + $0x8] sm:$0xff] }
 0x3f2   : > { %v4455_v49 = vpop.f32.mrf.mxu0 }
 0x3f3   : > { %v3036_v28 = vmax.f32 %v3031_v25, 0.0 }
 0x3f4   : > { %v3033_v33 = vpop.f32.mrf.mxu0 }
 0x3f5   : > { %4490 = vmatmul.mubr.f32.vlgmr.msra.gmra.mxu1 %v3036_v28 }
 0x3f6   : > { %4353 = vmatpush3.bf16.msra.mxu1 %v4921_v26  ;;  %v4456_v36 = vpop.f32.mrf.mxu0  ;;  %3550 = vmatprep.mubr.bf16.mxu1 %v4153_v27 }
 0x3f7   : > { %4354 = vmatprep.subr.bf16.mxu1 %v4923_v29 }
 0x3fa   : > { %4355 = vmatpush3.bf16.msra.mxu1 %v4924_v37 }
 0x3fb   : > { %4356 = vmatprep.subr.bf16.mxu1 %v4926_v39 }
 0x3fe   : > { %4357 = vmatpush3.bf16.msra.mxu1 %v4927_v40 }
 0x3ff   : > { %4358 = vmatprep.subr.bf16.mxu1 %v4929_v32 }
 0x402   : > { %4359 = vmatpush3.bf16.msra.mxu1 %v4930_v38 }
 0x403   : > { %4360 = vmatprep.subr.bf16.mxu1 %v4932_v41 }
 0x406   : > { %4361 = vmatpush3.bf16.msra.mxu1 %v4933_v42 }
 0x407   : > { %4362 = vmatprep.subr.bf16.mxu1 %v4935_v31 }
 0x40a   : > { %4363 = vmatpush3.bf16.msra.mxu1 %v4936_v43 }
 0x40b   : > { %4364 = vmatprep.subr.bf16.mxu1 %v4938_v44 }
 0x40e   : > { %4365 = vmatpush3.bf16.msra.mxu1 %v4939_v34 }
 0x40f   : > { %4366 = vmatprep.subr.bf16.mxu1 %v4941_v19 }
 0x410   : > { %v4346_v46 = vpop.f32.mrf.mxu0 }
 0x412   : > { %4367 = vmatpush3.bf16.msra.mxu1 %v4942_v45  ;;  %v4347_v47 = vpop.f32.mrf.mxu0 }
 0x413   : > { %4512 = vmatprep.subr.mxu1 %v5290_v15  ;;  %v4348_v51 = vadd.f32 %v4347_v47, %v4346_v46 }
 0x414   : > { %v4349_v53 = vpop.f32.mrf.mxu0 }
 0x415   : > { %3551 = vmatmul.mubr.bf16.vlgmr.msra.gmra.mxu1 %v4152_v22  ;;  %v3513_v16 = vadd.f32 %v4348_v51, %v4149_v12 }
 0x416   : > { %4544 = vmatprep.mubr.msk.f32.mxu1 %vm5291_vm4, %v5290_v15  ;;  %4513 = vmatpush3.msra.mxu1 %v4211_v48  ;;  %v4350_v55 = vpop.f32.mrf.mxu0 }
 0x417   : > { %4514 = vmatprep.subr.mxu1 %v5290_v15 }
 0x418   : > { %4515 = vmatpush3.msra.mxu1 %v4210_v50 }
 0x419   : > { %4516 = vmatprep.subr.mxu1 %v5290_v15 }
 0x41a   : > { %4517 = vmatpush3.msra.mxu1 %v4209_v54 }
 0x41b   : > { %4518 = vmatprep.subr.mxu1 %v5290_v15 }
 0x41c   : > { %4519 = vmatpush3.msra.mxu1 %v4208_v56 }
 0x41d   : > { %4520 = vmatprep.subr.mxu1 %v5290_v15 }
 0x41e   : > { %4521 = vmatpush3.msra.mxu1 %v4207_v57 }
 0x41f   : > { %4522 = vmatprep.subr.mxu1 %v5290_v15 }
 0x420   : > { %4523 = vmatpush3.msra.mxu1 %v4206_v58 }
 0x421   : > { %4524 = vmatprep.subr.mxu1 %v5290_v15 }
 0x422   : > { %4525 = vmatpush3.msra.mxu1 %v4205_v59 }
 0x423   : > { %4526 = vmatprep.subr.mxu1 %v5290_v15 }
 0x424   : > { %4527 = vmatpush3.msra.mxu1 %v4204_v60 }
 0x425   : > { %4528 = vmatprep.subr.mxu1 %v5290_v15 }
 0x426   : > { %4529 = vmatpush3.msra.mxu1 %v4203_v61 }
 0x427   : > { %4530 = vmatprep.subr.mxu1 %v5290_v15 }
 0x428   : > { %4531 = vmatpush3.msra.mxu1 %v4202_v62 }
 0x429   : > { %4532 = vmatprep.subr.mxu1 %v5290_v15 }
 0x42a   : > { %4533 = vmatpush3.msra.mxu1 %v4201_v63 }
 0x42b   : > { %4534 = vmatprep.subr.mxu1 %v5290_v15 }
 0x42c   : > { %4535 = vmatpush3.msra.mxu1 %v4200_v1 }
 0x42d   : > { %4536 = vmatprep.subr.mxu1 %v5290_v15 }
 0x42e   : > { %4537 = vmatpush3.msra.mxu1 %v4199_v52 }
 0x42f   : > { %4538 = vmatprep.subr.mxu1 %v5290_v15 }
 0x430   : > { %v3592_v0 = vpop.f32.mrf.mxu0  ;;  %4539 = vmatpush3.msra.mxu1 %v4198_v4 }
 0x431   : > { %4540 = vmatprep.subr.mxu1 %v5290_v15 }
 0x432   : > { %v4510_v2 = vpop.f32.mrf.mxu0  ;;  %4541 = vmatpush3.msra.mxu1 %v4197_v6 }
 0x433   : > { %4542 = vmatprep.subr.mxu1 %v5290_v15 }
 0x434   : > { %v3595_v3 = vpop.f32.mrf.mxu0  ;;  %4543 = vmatpush3.msra.mxu1 %v4196_v7 }
 0x436   : > { %v4511_v5 = vpop.f32.mrf.mxu0 }
 0x4b5   : > { %v3120_v9 = vpop.f32.mrf.mxu1 }
 0x4b6   : > { %v3124_v10 = vadd.f32 %v3120_v9, %v3037_v8 }
 0x4b7   : > { %v4491_v11 = vpop.f32.mrf.mxu1 }
 0x4b8   : > { %3126 = vst.msk [vmem:[%s6011_s0] sm:$0xff] %vm3125_vm5, %v3124_v10 }
 0x4d5   : > { %v4368_v13 = vpop.f32.mrf.mxu1 }
 0x4d7   : > { %v4369_v14 = vpop.f32.mrf.mxu1 }
 0x4d8   : > { %v4370_v15 = vadd.f32 %v4369_v14, %v4368_v13 }
 0x4d9   : > { %v4371_v17 = vpop.f32.mrf.mxu1 }
 0x4da   : > { %v3553_v18 = vadd.f32 %v4370_v15, %v3513_v16 }
 0x4db   : > { %v4372_v20 = vpop.f32.mrf.mxu1 }
 0x4dc   : > { %v3593_v35 = vadd.f32 %v3592_v0, %v3553_v18 }
 0x4de   : > { %v3598_v30 = vmax.f32 %v3593_v35, 0.0 }
 0x4e0   : > { %4545 = vmatmul.mubr.f32.vlgmr.msra.gmra.mxu1 %v3598_v30 }
 0x5a0   : > { %v3684_v23 = vpop.f32.mrf.mxu1 }
 0x5a1   : > { %v3688_v24 = vadd.f32 %v4195_v21, %v3684_v23 }
 0x5a2   : > { %v4546_v25 = vpop.f32.mrf.mxu1 }
 0x5a3   : > { %4212 = vst.msk [vmem:[%s6011_s0 + $0x8] sm:$0xff] %vm3125_vm5, %v3688_v24 }
 0x5a4 PF: > { %s6012_s24 = sld [smem:[#allocation26_spill]]  ;;  %s6014_s21 = smov %s5253_s22 }
 0x5a5   : > { %s6013_s29 = sld [smem:[#allocation27_spill]]  ;;  %s6015_s22 = smov %s5257_s23 }
 0x5aa   : > { %p27_p7 = scmp.ge.s32.totalorder %s6012_s24, 7  }
 0x5ab   : > { %s6016_s23 = smov %s6013_s29 }
 0x5ac   :  { %29 = sbr.rel (!%p27_p7) target bundleno = 13 (0xd), region = 208 }
 0x5b1   :  { %3701 = vsyncpa [#allocation4], 1 }
 0x5b2   :  { %3703 = vsyncpa [#allocation4 + $0x1], 1 }
 0x5b3   :  { %3704 = vsyncpa [#allocation6], 1 }
 0x5b4   :  { %3705 = vsyncpa [#allocation9], 1 }
 0x5b5   :  { %3706 = vsyncpa [#allocation12], 1 }
 0x5b6   :  { %3707 = vsyncpa [#allocation15], 1 }
 0x5b7   :  { %3709 = vsyncpa [#allocation15 + $0x1], 1 }
 0x5b8   :  { %3710 = vsyncpa [#allocation19], 1 }

</bundles_post_ra>
